<compile_context>
chip_gen: v7x
topology: tpu7x:2x2x1
jax: 0.10.0
libtpu: 0.0.40
codegen_flags: <defaults>
</compile_context>

<pallas_src>
import functools

import jax
import jax.numpy as jnp
from jax.experimental import pallas as pl
from jax.experimental.pallas import tpu as pltpu

_EPS = 1e-5
_LANE = 128


def _ceil_to(v, m):
    return ((v + m - 1) // m) * m


def _pick_row_tile(Ho, Wp, target_rows=512):
    """Largest divisor TH of Ho whose flattened output block (TH*Wp) stays within
    target_rows and is sublane-aligned; falls back to the full height."""
    best = None
    for th in range(1, Ho + 1):
        if Ho % th:
            continue
        if th * Wp <= target_rows and (th == Ho or (th * Wp) % 8 == 0):
            best = th
    return best if best is not None else Ho


# ------------------------------ fused kernel ------------------------------- #

def _bottleneck_kernel(x_ref, mask_ref, w1_ref, sh1_ref, w2_ref, sh2_ref,
                       w3_ref, sh3_ref, o_ref, y1_ref, *, Wp, rows_out):
    """One (sample, row-tile) step.

    Activations live in a width-padded, row-major-flattened pixel layout
    (rows = flattened padded pixels, lanes = channels padded to 128), so each of
    the nine 3x3 taps is a contiguous static row-offset slice of the y1 VMEM
    scratch. Columns >= Wo of every output row are junk, dropped by the wrapper.
    """
    # --- conv1 (1x1, stride folded by the wrapper) + BN1 + ReLU on this tile's
    # input window (2-row conv halo included; recomputed at tile edges).
    # `mask` zeroes the spatial-padding positions so conv2 sees true zero padding.
    y1 = jnp.dot(x_ref[...], w1_ref[...], preferred_element_type=jnp.float32)
    y1 = jnp.maximum(y1 + sh1_ref[...], 0.0) * mask_ref[...]
    y1_ref[...] = y1.astype(y1_ref.dtype)

    # --- conv2 (3x3, pad 1) + BN2 + ReLU: nine offset matmuls, value (register /
    # MRB) accumulation — no VMEM accumulator round-trips.
    acc = jnp.dot(y1_ref[0:rows_out, :], w2_ref[0],
                  preferred_element_type=jnp.float32)
    for tap in range(1, 9):
        ky, kx = divmod(tap, 3)
        off = ky * Wp + kx
        acc = acc + jnp.dot(y1_ref[off:off + rows_out, :], w2_ref[tap],
                            preferred_element_type=jnp.float32)
    y2 = jnp.maximum(acc + sh2_ref[...], 0.0).astype(w3_ref.dtype)

    # --- conv3 (1x1) + BN3, then the module's final F.relu; store in compute dtype.
    y3 = jnp.dot(y2, w3_ref[...], preferred_element_type=jnp.float32)
    o_ref[...] = jnp.maximum(y3 + sh3_ref[...], 0.0).astype(o_ref.dtype)


# --------------------------------- wrapper ---------------------------------- #

def _fold_bn(bn, conv_bias):
    gamma, beta, mean, var = bn
    scale = gamma / jnp.sqrt(var + _EPS)
    shift = (conv_bias - mean) * scale + beta
    return scale, shift


def bottleneck1_forward(x_nchw, params, stride, compute_dtype=jnp.bfloat16):
    """Equivalent of Bottleneck1.forward: F.relu(conv2(x)) with inference BN."""
    Cin, Cmid = params["w1"].shape
    Cout = params["w3"].shape[1]
    Cin_p = _ceil_to(Cin, _LANE)
    Cmid_p = _ceil_to(Cmid, _LANE)
    Cout_p = _ceil_to(Cout, _LANE)

    # ---- activation prep: NCHW->NHWC, stride subsample, pad, halo-window gather ----
    x = jnp.transpose(x_nchw, (0, 2, 3, 1)).astype(jnp.float32)   # NHWC
    xs = x[:, ::stride, ::stride, :]                               # conv1 stride
    N, Ho, Wo, _ = xs.shape
    Wp = Wo + 2
    TH = _pick_row_tile(Ho, Wp)          # output image-rows per grid step
    RT = Ho // TH                        # number of row tiles
    rows_in = (TH + 3) * Wp              # tile input rows (includes conv halo)
    rows_out = TH * Wp                   # tile output rows (cols >= Wo are junk)
    M2out = Ho * Wp

    xp = jnp.pad(xs, ((0, 0), (1, 2), (1, 1), (0, Cin_p - Cin)))  # (N, Ho+3, Wp, Cin_p)
    row_idx = jnp.arange(RT)[:, None] * TH + jnp.arange(TH + 3)[None, :]  # (RT, TH+3)
    xa = xp[:, row_idx].reshape(N, RT, rows_in, Cin_p).astype(compute_dtype)

    # interior mask: 1 at real pixels, 0 at spatial padding; gathered per row tile.
    mask_img = jnp.zeros((Ho + 3, Wp), jnp.float32).at[1:Ho + 1, 1:Wo + 1].set(1.0)
    mask = mask_img[row_idx].reshape(RT, rows_in, 1)

    # ---- weight prep: fold BN scale into weights, pad channels to lane width ----
    s1, sh1 = _fold_bn(params["bn1"], params["b1"])
    s2, sh2 = _fold_bn(params["bn2"], params["b2"])
    s3, sh3 = _fold_bn(params["bn3"], params["b3"])

    w1 = jnp.zeros((Cin_p, Cmid_p), jnp.float32)
    w1 = w1.at[:Cin, :Cmid].set(params["w1"] * s1[None, :]).astype(compute_dtype)
    w2 = jnp.zeros((9, Cmid_p, Cmid_p), jnp.float32)
    w2 = w2.at[:, :Cmid, :Cmid].set(params["w2"] * s2[None, None, :]).astype(compute_dtype)
    w3 = jnp.zeros((Cmid_p, Cout_p), jnp.float32)
    w3 = w3.at[:Cmid, :Cout].set(params["w3"] * s3[None, :]).astype(compute_dtype)
    sh1v = jnp.zeros((1, Cmid_p), jnp.float32).at[0, :Cmid].set(sh1)
    sh2v = jnp.zeros((1, Cmid_p), jnp.float32).at[0, :Cmid].set(sh2)
    sh3v = jnp.zeros((1, Cout_p), jnp.float32).at[0, :Cout].set(sh3)

    # ---- generation-aware VMEM budget (caps at 48 MiB so it is valid on v7x) ----
    isz = jnp.dtype(compute_dtype).itemsize
    vmem_est = (
        2 * rows_in * Cin_p * isz                    # x tile (double-buffered)
        + 2 * rows_in * 4                            # mask tile
        + 2 * rows_out * Cout_p * isz                # output tile
        + rows_in * Cmid_p * isz                     # y1 scratch
        + rows_out * Cmid_p * 4                      # conv2 value accumulator / spills
        + 2 * (Cin_p * Cmid_p + 9 * Cmid_p * Cmid_p + Cmid_p * Cout_p) * isz
        + 2 * (2 * Cmid_p + Cout_p) * 4
    )
    vmem_limit = int(min(max(2 * vmem_est, 24 << 20), 48 << 20))

    kern = functools.partial(_bottleneck_kernel, Wp=Wp, rows_out=rows_out)
    out = pl.pallas_call(
        kern,
        out_shape=jax.ShapeDtypeStruct((N, M2out, Cout_p), compute_dtype),
        grid_spec=pltpu.PrefetchScalarGridSpec(
            num_scalar_prefetch=0,
            grid=(N, RT),
            in_specs=[
                pl.BlockSpec((None, None, rows_in, Cin_p),
                             lambda n, r: (n, r, 0, 0)),              # x row-tile (+halo)
                pl.BlockSpec((None, rows_in, 1), lambda n, r: (r, 0, 0)),   # interior mask
                pl.BlockSpec((Cin_p, Cmid_p), lambda n, r: (0, 0)),         # w1 (resident)
                pl.BlockSpec((1, Cmid_p), lambda n, r: (0, 0)),             # shift1
                pl.BlockSpec((9, Cmid_p, Cmid_p), lambda n, r: (0, 0, 0)),  # w2 (resident)
                pl.BlockSpec((1, Cmid_p), lambda n, r: (0, 0)),             # shift2
                pl.BlockSpec((Cmid_p, Cout_p), lambda n, r: (0, 0)),        # w3 (resident)
                pl.BlockSpec((1, Cout_p), lambda n, r: (0, 0)),             # shift3
            ],
            out_specs=pl.BlockSpec((None, rows_out, Cout_p), lambda n, r: (n, r, 0)),
            scratch_shapes=[
                pltpu.VMEM((rows_in, Cmid_p), compute_dtype),   # padded y1 (flat layout)
            ],
        ),
        compiler_params=pltpu.CompilerParams(
            dimension_semantics=("parallel", "parallel"),
            vmem_limit_bytes=vmem_limit,
        ),
    )(xa, mask, w1, sh1v, w2, sh2v, w3, sh3v)

    out = out.reshape(N, Ho, Wp, Cout_p)[:, :, :Wo, :Cout]
    return jnp.transpose(out, (0, 3, 1, 2))   # back to NCHW (in compute_dtype)


# ------------------------- pure-JAX reference (f32) -------------------------- #

def bottleneck1_reference(x_nchw, params, stride):
    x = jnp.transpose(x_nchw, (0, 2, 3, 1)).astype(jnp.float32)

    def conv(x, w_hwio, s, pad):
        return jax.lax.conv_general_dilated(
            x, w_hwio, (s, s), pad, dimension_numbers=("NHWC", "HWIO", "NHWC"))

    def bn_relu(z, bias, bn_p):
        g, b, m, v = bn_p
        z = (z + bias - m) * (g / jnp.sqrt(v + _EPS)) + b
        return jnp.maximum(z, 0.0)

    Cin, Cmid = params["w1"].shape
    Cout = params["w3"].shape[1]
    y = conv(x, params["w1"].reshape(1, 1, Cin, Cmid), stride, "VALID")
    y = bn_relu(y, params["b1"], params["bn1"])
    y = conv(y, params["w2"].reshape(3, 3, Cmid, Cmid), 1, ((1, 1), (1, 1)))
    y = bn_relu(y, params["b2"], params["bn2"])
    y = conv(y, params["w3"].reshape(1, 1, Cmid, Cout), 1, "VALID")
    y = bn_relu(y, params["b3"], params["bn3"])   # final F.relu
    return jnp.transpose(y, (0, 3, 1, 2))


def make_params(key, in_channel, out_channel):
    mid = out_channel // 4
    ks = jax.random.split(key, 16)

    def bn_params(k, c):
        k1, k2, k3, k4 = jax.random.split(k, 4)
        gamma = 1.0 + 0.1 * jax.random.normal(k1, (c,), jnp.float32)
        beta = 0.1 * jax.random.normal(k2, (c,), jnp.float32)
        mean = 0.1 * jax.random.normal(k3, (c,), jnp.float32)
        var = jnp.abs(jax.random.normal(k4, (c,), jnp.float32)) + 0.5
        return (gamma, beta, mean, var)

    return {
        # conv weights stored in (Cin, Cout) / (tap, Cin, Cout) layout
        "w1": 0.2 * jax.random.normal(ks[0], (in_channel, mid), jnp.float32),
        "b1": 0.1 * jax.random.normal(ks[1], (mid,), jnp.float32),
        "bn1": bn_params(ks[2], mid),
        "w2": 0.2 * jax.random.normal(ks[3], (9, mid, mid), jnp.float32),
        "b2": 0.1 * jax.random.normal(ks[4], (mid,), jnp.float32),
        "bn2": bn_params(ks[5], mid),
        "w3": 0.2 * jax.random.normal(ks[6], (mid, out_channel), jnp.float32),
        "b3": 0.1 * jax.random.normal(ks[7], (out_channel,), jnp.float32),
        "bn3": bn_params(ks[8], out_channel),
    }


if __name__ == "__main__":
    key = jax.random.PRNGKey(0)
    k_x, k_p, k_x2, k_p2 = jax.random.split(key, 4)

    fwd = jax.jit(bottleneck1_forward, static_argnames=("stride", "compute_dtype"))

    # ---- config 1: module's nominal small shapes (down_sample=True -> stride 2) ----
    in_channel, out_channel, down_sample = 8, 16, True
    stride = 2 if down_sample else 1
    N, H, W = 2, 16, 16
    x = jax.random.normal(k_x, (N, in_channel, H, W), jnp.float32)  # NCHW like PyTorch
    params = make_params(k_p, in_channel, out_channel)
    ref = bottleneck1_reference(x, params, stride)

    # f32-compute run: tight check of fused indexing / BN folding.
    out_f32 = jax.block_until_ready(
        fwd(x, params, stride=stride, compute_dtype=jnp.float32))
    assert out_f32.shape == (N, out_channel, H // stride, W // stride)
    assert jnp.allclose(out_f32, ref, rtol=1e-4, atol=1e-4)

    # bf16-compute run (production path): loose check vs the f32 reference.
    out_bf16 = jax.block_until_ready(
        fwd(x, params, stride=stride, compute_dtype=jnp.bfloat16))
    assert out_bf16.shape == (N, out_channel, H // stride, W // stride)
    assert jnp.allclose(out_bf16.astype(jnp.float32), ref, rtol=1e-1, atol=1e-1)

    # ---- config 2: larger spatial map (stride 1) to exercise the row-tile grid ----
    in2, out2 = 16, 32
    N2, H2, W2 = 1, 32, 32
    x2 = jax.random.normal(k_x2, (N2, in2, H2, W2), jnp.float32)
    params2 = make_params(k_p2, in2, out2)
    ref2 = bottleneck1_reference(x2, params2, 1)
    out2_f32 = jax.block_until_ready(
        fwd(x2, params2, stride=1, compute_dtype=jnp.float32))
    assert out2_f32.shape == (N2, out2, H2, W2)
    assert jnp.allclose(out2_f32, ref2, rtol=1e-4, atol=1e-4)

    print("KERNEL_OK")
</pallas_src>

<mosaic_0001>
module attributes {stable_mosaic.version = 11 : i64} {
  func.func @_bottleneck_kernel(%arg0: i32, %arg1: i32, %arg2: memref<1x1x110x128xf32, #tpu.memory_space<vmem>>, %arg3: memref<1x110x1xf32, #tpu.memory_space<vmem>>, %arg4: memref<128x128xf32, #tpu.memory_space<vmem>>, %arg5: memref<1x128xf32, #tpu.memory_space<vmem>>, %arg6: memref<9x128x128xf32, #tpu.memory_space<vmem>>, %arg7: memref<1x128xf32, #tpu.memory_space<vmem>>, %arg8: memref<128x128xf32, #tpu.memory_space<vmem>>, %arg9: memref<1x128xf32, #tpu.memory_space<vmem>>, %arg10: memref<1x80x128xf32, #tpu.memory_space<vmem>>, %arg11: memref<110x128xf32, #tpu.memory_space<vmem>>) attributes {dimension_semantics = [#tpu.dimension_semantics<parallel>, #tpu.dimension_semantics<parallel>], iteration_bounds = array<i64: 2, 1>, scalar_prefetch = 0 : i64, scratch_operands = 1 : i64, tpu.core_type = #tpu.core_type<tc>, window_params = [{transform_indices = @transform_0, window_bounds = array<i64: 1, 1, 110, 128>}, {transform_indices = @transform_1, window_bounds = array<i64: 1, 110, 1>}, {pipeline_mode = #tpu.pipeline_mode<synchronous>, transform_indices = @transform_2, window_bounds = array<i64: 128, 128>}, {pipeline_mode = #tpu.pipeline_mode<synchronous>, transform_indices = @transform_3, window_bounds = array<i64: 1, 128>}, {pipeline_mode = #tpu.pipeline_mode<synchronous>, transform_indices = @transform_4, window_bounds = array<i64: 9, 128, 128>}, {pipeline_mode = #tpu.pipeline_mode<synchronous>, transform_indices = @transform_5, window_bounds = array<i64: 1, 128>}, {pipeline_mode = #tpu.pipeline_mode<synchronous>, transform_indices = @transform_6, window_bounds = array<i64: 128, 128>}, {pipeline_mode = #tpu.pipeline_mode<synchronous>, transform_indices = @transform_7, window_bounds = array<i64: 1, 128>}, {transform_indices = @transform_8, window_bounds = array<i64: 1, 80, 128>}]} {
    %c0 = arith.constant 0 : index
    %c0_0 = arith.constant 0 : index
    %c0_1 = arith.constant 0 : index
    %c0_2 = arith.constant 0 : index
    %0 = vector.load %arg2[%c0, %c0_0, %c0_1, %c0_2] : memref<1x1x110x128xf32, #tpu.memory_space<vmem>>, vector<1x1x110x128xf32>
    %1 = vector.shape_cast %0 : vector<1x1x110x128xf32> to vector<110x128xf32>
    %c0_3 = arith.constant 0 : index
    %c0_4 = arith.constant 0 : index
    %2 = vector.load %arg4[%c0_3, %c0_4] : memref<128x128xf32, #tpu.memory_space<vmem>>, vector<128x128xf32>
    %cst = arith.constant dense<0.000000e+00> : vector<110x128xf32>
    %3 = tpu.matmul %1, %2, %cst {dimension_numbers = #tpu.dot_dimension_numbers<[1], [0], [0], [1], [0, 0, 1, 1], [], []>} : vector<110x128xf32>, vector<128x128xf32>, vector<110x128xf32> -> vector<110x128xf32>
    %c0_5 = arith.constant 0 : index
    %c0_6 = arith.constant 0 : index
    %4 = vector.load %arg5[%c0_5, %c0_6] : memref<1x128xf32, #tpu.memory_space<vmem>>, vector<1x128xf32>
    %5 = vector.broadcast %4 : vector<1x128xf32> to vector<110x128xf32>
    %6 = arith.addf %3, %5 : vector<110x128xf32>
    %cst_7 = arith.constant 0.000000e+00 : f32
    %7 = vector.broadcast %cst_7 : f32 to vector<110x128xf32>
    %8 = arith.maximumf %6, %7 : vector<110x128xf32>
    %c0_8 = arith.constant 0 : index
    %c0_9 = arith.constant 0 : index
    %c0_10 = arith.constant 0 : index
    %9 = vector.load %arg3[%c0_8, %c0_9, %c0_10] : memref<1x110x1xf32, #tpu.memory_space<vmem>>, vector<1x110x1xf32>
    %10 = vector.shape_cast %9 : vector<1x110x1xf32> to vector<110x1xf32>
    %11 = vector.broadcast %10 : vector<110x1xf32> to vector<110x128xf32>
    %12 = arith.mulf %8, %11 : vector<110x128xf32>
    %c0_11 = arith.constant 0 : index
    %c0_12 = arith.constant 0 : index
    %13 = vector.load %arg11[%c0_11, %c0_12] : memref<110x128xf32, #tpu.memory_space<vmem>>, vector<110x128xf32>
    tpu.vector_store %arg11[%c0_11, %c0_12], %12 {strides = array<i32>} : memref<110x128xf32, #tpu.memory_space<vmem>>, vector<110x128xf32>,
    %c0_13 = arith.constant 0 : index
    %c0_14 = arith.constant 0 : index
    %14 = vector.load %arg11[%c0_13, %c0_14] : memref<110x128xf32, #tpu.memory_space<vmem>>, vector<80x128xf32>
    %c0_15 = arith.constant 0 : index
    %c0_16 = arith.constant 0 : index
    %c0_17 = arith.constant 0 : index
    %15 = vector.load %arg6[%c0_15, %c0_16, %c0_17] : memref<9x128x128xf32, #tpu.memory_space<vmem>>, vector<1x128x128xf32>
    %16 = vector.shape_cast %15 : vector<1x128x128xf32> to vector<128x128xf32>
    %cst_18 = arith.constant dense<0.000000e+00> : vector<80x128xf32>
    %17 = tpu.matmul %14, %16, %cst_18 {dimension_numbers = #tpu.dot_dimension_numbers<[1], [0], [0], [1], [0, 0, 1, 1], [], []>} : vector<80x128xf32>, vector<128x128xf32>, vector<80x128xf32> -> vector<80x128xf32>
    %c1 = arith.constant 1 : index
    %c0_19 = arith.constant 0 : index
    %18 = vector.load %arg11[%c1, %c0_19] : memref<110x128xf32, #tpu.memory_space<vmem>>, vector<80x128xf32>
    %c1_20 = arith.constant 1 : index
    %c0_21 = arith.constant 0 : index
    %c0_22 = arith.constant 0 : index
    %19 = vector.load %arg6[%c1_20, %c0_21, %c0_22] : memref<9x128x128xf32, #tpu.memory_space<vmem>>, vector<1x128x128xf32>
    %20 = vector.shape_cast %19 : vector<1x128x128xf32> to vector<128x128xf32>
    %cst_23 = arith.constant dense<0.000000e+00> : vector<80x128xf32>
    %21 = tpu.matmul %18, %20, %cst_23 {dimension_numbers = #tpu.dot_dimension_numbers<[1], [0], [0], [1], [0, 0, 1, 1], [], []>} : vector<80x128xf32>, vector<128x128xf32>, vector<80x128xf32> -> vector<80x128xf32>
    %22 = arith.addf %17, %21 : vector<80x128xf32>
    %c2 = arith.constant 2 : index
    %c0_24 = arith.constant 0 : index
    %23 = vector.load %arg11[%c2, %c0_24] : memref<110x128xf32, #tpu.memory_space<vmem>>, vector<80x128xf32>
    %c2_25 = arith.constant 2 : index
    %c0_26 = arith.constant 0 : index
    %c0_27 = arith.constant 0 : index
    %24 = vector.load %arg6[%c2_25, %c0_26, %c0_27] : memref<9x128x128xf32, #tpu.memory_space<vmem>>, vector<1x128x128xf32>
    %25 = vector.shape_cast %24 : vector<1x128x128xf32> to vector<128x128xf32>
    %cst_28 = arith.constant dense<0.000000e+00> : vector<80x128xf32>
    %26 = tpu.matmul %23, %25, %cst_28 {dimension_numbers = #tpu.dot_dimension_numbers<[1], [0], [0], [1], [0, 0, 1, 1], [], []>} : vector<80x128xf32>, vector<128x128xf32>, vector<80x128xf32> -> vector<80x128xf32>
    %27 = arith.addf %22, %26 : vector<80x128xf32>
    %c10 = arith.constant 10 : index
    %c0_29 = arith.constant 0 : index
    %28 = vector.load %arg11[%c10, %c0_29] : memref<110x128xf32, #tpu.memory_space<vmem>>, vector<80x128xf32>
    %c3 = arith.constant 3 : index
    %c0_30 = arith.constant 0 : index
    %c0_31 = arith.constant 0 : index
    %29 = vector.load %arg6[%c3, %c0_30, %c0_31] : memref<9x128x128xf32, #tpu.memory_space<vmem>>, vector<1x128x128xf32>
    %30 = vector.shape_cast %29 : vector<1x128x128xf32> to vector<128x128xf32>
    %cst_32 = arith.constant dense<0.000000e+00> : vector<80x128xf32>
    %31 = tpu.matmul %28, %30, %cst_32 {dimension_numbers = #tpu.dot_dimension_numbers<[1], [0], [0], [1], [0, 0, 1, 1], [], []>} : vector<80x128xf32>, vector<128x128xf32>, vector<80x128xf32> -> vector<80x128xf32>
    %32 = arith.addf %27, %31 : vector<80x128xf32>
    %c11 = arith.constant 11 : index
    %c0_33 = arith.constant 0 : index
    %33 = vector.load %arg11[%c11, %c0_33] : memref<110x128xf32, #tpu.memory_space<vmem>>, vector<80x128xf32>
    %c4 = arith.constant 4 : index
    %c0_34 = arith.constant 0 : index
    %c0_35 = arith.constant 0 : index
    %34 = vector.load %arg6[%c4, %c0_34, %c0_35] : memref<9x128x128xf32, #tpu.memory_space<vmem>>, vector<1x128x128xf32>
    %35 = vector.shape_cast %34 : vector<1x128x128xf32> to vector<128x128xf32>
    %cst_36 = arith.constant dense<0.000000e+00> : vector<80x128xf32>
    %36 = tpu.matmul %33, %35, %cst_36 {dimension_numbers = #tpu.dot_dimension_numbers<[1], [0], [0], [1], [0, 0, 1, 1], [], []>} : vector<80x128xf32>, vector<128x128xf32>, vector<80x128xf32> -> vector<80x128xf32>
    %37 = arith.addf %32, %36 : vector<80x128xf32>
    %c12 = arith.constant 12 : index
    %c0_37 = arith.constant 0 : index
    %38 = vector.load %arg11[%c12, %c0_37] : memref<110x128xf32, #tpu.memory_space<vmem>>, vector<80x128xf32>
    %c5 = arith.constant 5 : index
    %c0_38 = arith.constant 0 : index
    %c0_39 = arith.constant 0 : index
    %39 = vector.load %arg6[%c5, %c0_38, %c0_39] : memref<9x128x128xf32, #tpu.memory_space<vmem>>, vector<1x128x128xf32>
    %40 = vector.shape_cast %39 : vector<1x128x128xf32> to vector<128x128xf32>
    %cst_40 = arith.constant dense<0.000000e+00> : vector<80x128xf32>
    %41 = tpu.matmul %38, %40, %cst_40 {dimension_numbers = #tpu.dot_dimension_numbers<[1], [0], [0], [1], [0, 0, 1, 1], [], []>} : vector<80x128xf32>, vector<128x128xf32>, vector<80x128xf32> -> vector<80x128xf32>
    %42 = arith.addf %37, %41 : vector<80x128xf32>
    %c20 = arith.constant 20 : index
    %c0_41 = arith.constant 0 : index
    %43 = vector.load %arg11[%c20, %c0_41] : memref<110x128xf32, #tpu.memory_space<vmem>>, vector<80x128xf32>
    %c6 = arith.constant 6 : index
    %c0_42 = arith.constant 0 : index
    %c0_43 = arith.constant 0 : index
    %44 = vector.load %arg6[%c6, %c0_42, %c0_43] : memref<9x128x128xf32, #tpu.memory_space<vmem>>, vector<1x128x128xf32>
    %45 = vector.shape_cast %44 : vector<1x128x128xf32> to vector<128x128xf32>
    %cst_44 = arith.constant dense<0.000000e+00> : vector<80x128xf32>
    %46 = tpu.matmul %43, %45, %cst_44 {dimension_numbers = #tpu.dot_dimension_numbers<[1], [0], [0], [1], [0, 0, 1, 1], [], []>} : vector<80x128xf32>, vector<128x128xf32>, vector<80x128xf32> -> vector<80x128xf32>
    %47 = arith.addf %42, %46 : vector<80x128xf32>
    %c21 = arith.constant 21 : index
    %c0_45 = arith.constant 0 : index
    %48 = vector.load %arg11[%c21, %c0_45] : memref<110x128xf32, #tpu.memory_space<vmem>>, vector<80x128xf32>
    %c7 = arith.constant 7 : index
    %c0_46 = arith.constant 0 : index
    %c0_47 = arith.constant 0 : index
    %49 = vector.load %arg6[%c7, %c0_46, %c0_47] : memref<9x128x128xf32, #tpu.memory_space<vmem>>, vector<1x128x128xf32>
    %50 = vector.shape_cast %49 : vector<1x128x128xf32> to vector<128x128xf32>
    %cst_48 = arith.constant dense<0.000000e+00> : vector<80x128xf32>
    %51 = tpu.matmul %48, %50, %cst_48 {dimension_numbers = #tpu.dot_dimension_numbers<[1], [0], [0], [1], [0, 0, 1, 1], [], []>} : vector<80x128xf32>, vector<128x128xf32>, vector<80x128xf32> -> vector<80x128xf32>
    %52 = arith.addf %47, %51 : vector<80x128xf32>
    %c22 = arith.constant 22 : index
    %c0_49 = arith.constant 0 : index
    %53 = vector.load %arg11[%c22, %c0_49] : memref<110x128xf32, #tpu.memory_space<vmem>>, vector<80x128xf32>
    %c8 = arith.constant 8 : index
    %c0_50 = arith.constant 0 : index
    %c0_51 = arith.constant 0 : index
    %54 = vector.load %arg6[%c8, %c0_50, %c0_51] : memref<9x128x128xf32, #tpu.memory_space<vmem>>, vector<1x128x128xf32>
    %55 = vector.shape_cast %54 : vector<1x128x128xf32> to vector<128x128xf32>
    %cst_52 = arith.constant dense<0.000000e+00> : vector<80x128xf32>
    %56 = tpu.matmul %53, %55, %cst_52 {dimension_numbers = #tpu.dot_dimension_numbers<[1], [0], [0], [1], [0, 0, 1, 1], [], []>} : vector<80x128xf32>, vector<128x128xf32>, vector<80x128xf32> -> vector<80x128xf32>
    %57 = arith.addf %52, %56 : vector<80x128xf32>
    %c0_53 = arith.constant 0 : index
    %c0_54 = arith.constant 0 : index
    %58 = vector.load %arg7[%c0_53, %c0_54] : memref<1x128xf32, #tpu.memory_space<vmem>>, vector<1x128xf32>
    %59 = vector.broadcast %58 : vector<1x128xf32> to vector<80x128xf32>
    %60 = arith.addf %57, %59 : vector<80x128xf32>
    %cst_55 = arith.constant 0.000000e+00 : f32
    %61 = vector.broadcast %cst_55 : f32 to vector<80x128xf32>
    %62 = arith.maximumf %60, %61 : vector<80x128xf32>
    %c0_56 = arith.constant 0 : index
    %c0_57 = arith.constant 0 : index
    %63 = vector.load %arg8[%c0_56, %c0_57] : memref<128x128xf32, #tpu.memory_space<vmem>>, vector<128x128xf32>
    %cst_58 = arith.constant dense<0.000000e+00> : vector<80x128xf32>
    %64 = tpu.matmul %62, %63, %cst_58 {dimension_numbers = #tpu.dot_dimension_numbers<[1], [0], [0], [1], [0, 0, 1, 1], [], []>} : vector<80x128xf32>, vector<128x128xf32>, vector<80x128xf32> -> vector<80x128xf32>
    %c0_59 = arith.constant 0 : index
    %c0_60 = arith.constant 0 : index
    %65 = vector.load %arg9[%c0_59, %c0_60] : memref<1x128xf32, #tpu.memory_space<vmem>>, vector<1x128xf32>
    %66 = vector.broadcast %65 : vector<1x128xf32> to vector<80x128xf32>
    %67 = arith.addf %64, %66 : vector<80x128xf32>
    %cst_61 = arith.constant 0.000000e+00 : f32
    %68 = vector.broadcast %cst_61 : f32 to vector<80x128xf32>
    %69 = arith.maximumf %67, %68 : vector<80x128xf32>
    %c0_62 = arith.constant 0 : index
    %c0_63 = arith.constant 0 : index
    %c0_64 = arith.constant 0 : index
    %70 = vector.load %arg10[%c0_62, %c0_63, %c0_64] : memref<1x80x128xf32, #tpu.memory_space<vmem>>, vector<1x80x128xf32>
    %71 = vector.shape_cast %70 : vector<1x80x128xf32> to vector<80x128xf32>
    %72 = vector.shape_cast %69 : vector<80x128xf32> to vector<1x80x128xf32>
    tpu.vector_store %arg10[%c0_62, %c0_63, %c0_64], %72 {strides = array<i32>} : memref<1x80x128xf32, #tpu.memory_space<vmem>>, vector<1x80x128xf32>,
    return
  }
  func.func @transform_0(%arg0: i32, %arg1: i32) -> (i32, i32, i32, i32) {
    %c0_i32 = arith.constant 0 : i32
    %c0_i32_0 = arith.constant 0 : i32
    %c0_i32_1 = arith.constant 0 : i32
    return %arg0, %arg1, %c0_i32, %c0_i32_0 : i32, i32, i32, i32
  }
  func.func @transform_1(%arg0: i32, %arg1: i32) -> (i32, i32, i32) {
    %c0_i32 = arith.constant 0 : i32
    %c0_i32_0 = arith.constant 0 : i32
    %c0_i32_1 = arith.constant 0 : i32
    return %arg1, %c0_i32, %c0_i32_0 : i32, i32, i32
  }
  func.func @transform_2(%arg0: i32, %arg1: i32) -> (i32, i32) {
    %c0_i32 = arith.constant 0 : i32
    %c0_i32_0 = arith.constant 0 : i32
    %c0_i32_1 = arith.constant 0 : i32
    return %c0_i32, %c0_i32_0 : i32, i32
  }
  func.func @transform_3(%arg0: i32, %arg1: i32) -> (i32, i32) {
    %c0_i32 = arith.constant 0 : i32
    %c0_i32_0 = arith.constant 0 : i32
    %c0_i32_1 = arith.constant 0 : i32
    return %c0_i32, %c0_i32_0 : i32, i32
  }
  func.func @transform_4(%arg0: i32, %arg1: i32) -> (i32, i32, i32) {
    %c0_i32 = arith.constant 0 : i32
    %c0_i32_0 = arith.constant 0 : i32
    %c0_i32_1 = arith.constant 0 : i32
    %c0_i32_2 = arith.constant 0 : i32
    return %c0_i32, %c0_i32_0, %c0_i32_1 : i32, i32, i32
  }
  func.func @transform_5(%arg0: i32, %arg1: i32) -> (i32, i32) {
    %c0_i32 = arith.constant 0 : i32
    %c0_i32_0 = arith.constant 0 : i32
    %c0_i32_1 = arith.constant 0 : i32
    return %c0_i32, %c0_i32_0 : i32, i32
  }
  func.func @transform_6(%arg0: i32, %arg1: i32) -> (i32, i32) {
    %c0_i32 = arith.constant 0 : i32
    %c0_i32_0 = arith.constant 0 : i32
    %c0_i32_1 = arith.constant 0 : i32
    return %c0_i32, %c0_i32_0 : i32, i32
  }
  func.func @transform_7(%arg0: i32, %arg1: i32) -> (i32, i32) {
    %c0_i32 = arith.constant 0 : i32
    %c0_i32_0 = arith.constant 0 : i32
    %c0_i32_1 = arith.constant 0 : i32
    return %c0_i32, %c0_i32_0 : i32, i32
  }
  func.func @transform_8(%arg0: i32, %arg1: i32) -> (i32, i32, i32) {
    %c0_i32 = arith.constant 0 : i32
    %c0_i32_0 = arith.constant 0 : i32
    return %arg0, %arg1, %c0_i32 : i32, i32, i32
  }
}

</mosaic_0001>

<bundles_post_ra>
// kernel: bottleneck1_forward.1
= control target key start
LH: loop header
LB: loop body
LE: loop exit
PB: predicated region body
PF: predicated region fallthrough
CT: control target
= control target key end

     0   :  { %s3783_s27 = smov 0   ;;  %s3785_s28 = smov 0   ;;  %s4536_s0 = inlined_call_operand.vmem [shape: f32[2,1,110,128], index: 0, kind: input, shape index: {}]   ;;  %s4537_s1 = inlined_call_operand.vmem [shape: f32[1,110,1], index: 1, kind: input, shape index: {}]   ;;  %s4538_s2 = inlined_call_operand.vmem [shape: f32[128,128], index: 2, kind: input, shape index: {}]   ;;  %s4539_s3 = inlined_call_operand.vmem [shape: f32[1,128], index: 3, kind: input, shape index: {}]   ;;  %s4540_s4 = inlined_call_operand.vmem [shape: f32[9,128,128], index: 4, kind: input, shape index: {}]   ;;  %s4541_s5 = inlined_call_operand.vmem [shape: f32[1,128], index: 5, kind: input, shape index: {}]   ;;  %s4542_s6 = inlined_call_operand.vmem [shape: f32[128,128], index: 6, kind: input, shape index: {}]   ;;  %s4543_s7 = inlined_call_operand.vmem [shape: f32[1,128], index: 7, kind: input, shape index: {}]   ;;  %s4544_s8 = inlined_call_operand.vmem [shape: f32[2,80,128], index: 8, kind: output, shape index: {}]  }
   0x1   :  { %s3787_s29 = smov 0  }
   0x2 LB: > { %s30_s30 = sadd.s32 1, %s3731_s28  ;;  %p2303_p0 = scmp.ge.s32.totalorder %s3735_s29, 1  ;;  %s3735_s29 = sphi %s3787_s29, %s18_s29   ;;  %s3731_s28 = sphi %s3785_s28, %s4546_s28   ;;  %s3727_s27 = sphi %s3783_s27, %s4545_s27  }
   0x3   : > { %p32_p1 = scmp.ge.s32.totalorder %s30_s30, 2  ;;  %p292_p2 = scmp.lt.s32.totalorder %s3735_s29, 3 }
   0x5   : > { %s4548_s30 = smov (%p32_p1, %s30_s30), 0  ;;  %p293_p3 = pnand %p2303_p0, %p292_p2 }
   0x6   : > { %v377_v0 = vld [vmem:[%s4538_s2] sm:$0xff] (!%p293_p3)  ;;  %v378_v1 = vld [vmem:[%s4538_s2 + $0x8] sm:$0xff] (!%p293_p3)  ;;  %v379_v2 = vld [vmem:[%s4538_s2 + $0x10] sm:$0xff] (!%p293_p3)  ;;  %p339_p4 = scmp.lt.s32.totalorder (!%p293_p3), %s3727_s27, 1  ;;  %v3737_v5 = vmov (!%p293_p3), 0  }
   0x7   : > { %296 = sbr.rel (%p293_p3) target bundleno = 888 (0x378), region = 52  ;;  %v3252_v3 = vpack.c.bf16 (!%p293_p3), %v378_v1, %v377_v0  ;;  %v380_v4 = vld [vmem:[%s4538_s2 + $0x18] sm:$0xff] (!%p293_p3)  ;;  %3711 = vset.pattern.permute.xlu0 (!%p293_p3), %v3737_v5  ;;  %3712 = vset.pattern.permute.xlu1 (!%p293_p3), %v3737_v5  ;;  %v381_v7 = vld [vmem:[%s4538_s2 + $0x20] sm:$0xff] (!%p293_p3)  ;;  %v382_v8 = vld [vmem:[%s4538_s2 + $0x28] sm:$0xff] (!%p293_p3) }
   0x8   : > { %v3256_v6 = vpack.c.bf16 (!%p293_p3), %v380_v4, %v379_v2  ;;  %v3260_v9 = vpack.c.bf16 (!%p293_p3), %v382_v8, %v381_v7  ;;  %v550_v10 = vld [vmem:[%s4537_s1 + $0x8] sm:$0xff] (!%p293_p3)  ;;  %v552_v11 = vld [vmem:[%s4537_s1 + $0x18] sm:$0xff] (!%p293_p3)  ;;  %v383_v12 = vld [vmem:[%s4538_s2 + $0x30] sm:$0xff] (!%p293_p3) }
   0x9   : > { %3253 = vmatprep.subr.bf16.mxu0 (!%p293_p3), %v3252_v3  ;;  %v384_v13 = vld [vmem:[%s4538_s2 + $0x38] sm:$0xff] (!%p293_p3)  ;;  %570 = vperm.xlu0 (!%p293_p3), %3711, %v550_v10   ;;  %v551_v15 = vld [vmem:[%s4537_s1 + $0x10] sm:$0xff] (!%p293_p3)  ;;  %v553_v16 = vld [vmem:[%s4537_s1 + $0x20] sm:$0xff] (!%p293_p3) }
   0xa   : > { %3255 = vmatpush3.bf16.msra.mxu0 (!%p293_p3), %v3252_v3  ;;  %580 = vperm.xlu1 (!%p293_p3), %3712, %v552_v11   ;;  %v3264_v17 = vpack.c.bf16 (!%p293_p3), %v384_v13, %v383_v12  ;;  %v385_v18 = vld [vmem:[%s4538_s2 + $0x40] sm:$0xff] (!%p293_p3)  ;;  %v386_v19 = vld [vmem:[%s4538_s2 + $0x48] sm:$0xff] (!%p293_p3)  ;;  %v555_v21 = vld [vmem:[%s4537_s1 + $0x30] sm:$0xff] (!%p293_p3) }
   0xb   : > { %3257 = vmatprep.subr.bf16.mxu0 (!%p293_p3), %v3256_v6  ;;  %v554_v20 = vld [vmem:[%s4537_s1 + $0x28] sm:$0xff] (!%p293_p3)  ;;  %v3268_v22 = vpack.c.bf16 (!%p293_p3), %v386_v19, %v385_v18  ;;  %v387_v23 = vld [vmem:[%s4538_s2 + $0x50] sm:$0xff] (!%p293_p3)  ;;  %v388_v24 = vld [vmem:[%s4538_s2 + $0x58] sm:$0xff] (!%p293_p3) }
   0xc   : > { %v556_v25 = vld [vmem:[%s4537_s1 + $0x38] sm:$0xff] (!%p293_p3)  ;;  %v557_v26 = vld [vmem:[%s4537_s1 + $0x40] sm:$0xff] (!%p293_p3)  ;;  %v2340_v28 = vld [vmem:[%s4540_s4 + $0x188] sm:$0xff] (!%p293_p3)  ;;  %v3272_v31 = vpack.c.bf16 (!%p293_p3), %v388_v24, %v387_v23 }
   0xd   : > { %575 = vperm.xlu0 (!%p293_p3), %3711, %v551_v15   ;;  %v2339_v27 = vld [vmem:[%s4540_s4 + $0x180] sm:$0xff] (!%p293_p3)  ;;  %v2341_v30 = vld [vmem:[%s4540_s4 + $0x190] sm:$0xff] (!%p293_p3)  ;;  %v2342_v33 = vld [vmem:[%s4540_s4 + $0x198] sm:$0xff] (!%p293_p3) }
   0xe   : > { %s4550_s27 = smov (!%p339_p4, %s3727_s27), 1  ;;  %3259 = vmatpush3.bf16.msra.mxu0 %v3256_v6  ;;  %585 = vperm.xlu1 %3712, %v553_v16   ;;  %v3380_v29 = vpack.c.bf16 %v2340_v28, %v2339_v27  ;;  %v389_v32 = vld [vmem:[%s4538_s2 + $0x60] sm:$0xff]  ;;  %v390_v34 = vld [vmem:[%s4538_s2 + $0x68] sm:$0xff]  ;;  %v3384_v35 = vpack.c.bf16 %v2342_v33, %v2341_v30  ;;  %v559_v39 = vld [vmem:[%s4537_s1 + $0x50] sm:$0xff] }
   0xf   : > { %s3684_s21 = smul.u32 112, %s4550_s27  ;;  %3261 = vmatprep.subr.bf16.mxu0 %v3260_v9  ;;  %v2343_v36 = vld [vmem:[%s4540_s4 + $0x1a0] sm:$0xff]  ;;  %v2344_v37 = vld [vmem:[%s4540_s4 + $0x1a8] sm:$0xff]  ;;  %v3276_v40 = vpack.c.bf16 %v390_v34, %v389_v32  ;;  %v391_v42 = vld [vmem:[%s4538_s2 + $0x70] sm:$0xff] }
  0x10   : > { %v558_v38 = vld [vmem:[%s4537_s1 + $0x48] sm:$0xff]  ;;  %3381 = vmatprep.subr.bf16.mxu1 %v3380_v29  ;;  %v3388_v41 = vpack.c.bf16 %v2344_v37, %v2343_v36  ;;  %v392_v43 = vld [vmem:[%s4538_s2 + $0x78] sm:$0xff]  ;;  %v549_v45 = vld [vmem:[%s4537_s1] sm:$0xff] }
  0x11   : > { %s3837_s14 = scalar_lea.vmem %s4536_s0, %s3684_s21  ;;  %590 = vperm.xlu0 %3711, %v554_v20   ;;  %3383 = vmatpush3.bf16.msra.mxu1 %v3380_v29  ;;  %v560_v44 = vld [vmem:[%s4537_s1 + $0x58] sm:$0xff]  ;;  %v3280_v46 = vpack.c.bf16 %v392_v43, %v391_v42  ;;  %v2307_v47 = vld [vmem:[%s4540_s4 + $0x80] sm:$0xff]  ;;  %v2308_v48 = vld [vmem:[%s4540_s4 + $0x88] sm:$0xff] }
  0x12   : > { %v363_v14 = vld [vmem:[%s3837_s14] sm:$0xff]  ;;  %3263 = vmatpush3.bf16.msra.mxu0 %v3260_v9  ;;  %595 = vperm.xlu1 %3712, %v555_v21   ;;  %v562_v50 = vld [vmem:[%s4537_s1 + $0x68] sm:$0x3f]  ;;  %v3284_v51 = vpack.c.bf16 %v2308_v48, %v2307_v47  ;;  %v2309_v52 = vld [vmem:[%s4540_s4 + $0x90] sm:$0xff] }
  0x13   : > { %2761 = vmatprep.mubr.f32.mxu0 %v363_v14  ;;  %3265 = vmatprep.subr.bf16.mxu0 %v3264_v17  ;;  %v561_v49 = vld [vmem:[%s4537_s1 + $0x60] sm:$0xff]  ;;  %v2310_v53 = vld [vmem:[%s4540_s4 + $0x98] sm:$0xff]  ;;  %v364_v54 = vld [vmem:[%s3837_s14 + $0x8] sm:$0xff] }
  0x14   : > { %3385 = vmatprep.subr.bf16.mxu1 %v3384_v35  ;;  %v365_v55 = vld [vmem:[%s3837_s14 + $0x10] sm:$0xff]  ;;  %v3288_v56 = vpack.c.bf16 %v2310_v53, %v2309_v52  ;;  %v2311_v57 = vld [vmem:[%s4540_s4 + $0xa0] sm:$0xff]  ;;  %v2312_v58 = vld [vmem:[%s4540_s4 + $0xa8] sm:$0xff] }
  0x15   : > { %600 = vperm.xlu0 %3711, %v556_v25   ;;  %3387 = vmatpush3.bf16.msra.mxu1 %v3384_v35  ;;  %v366_v59 = vld [vmem:[%s3837_s14 + $0x18] sm:$0xff]  ;;  %v367_v60 = vld [vmem:[%s3837_s14 + $0x20] sm:$0xff]  ;;  %v3292_v61 = vpack.c.bf16 %v2312_v58, %v2311_v57  ;;  %v2313_v62 = vld [vmem:[%s4540_s4 + $0xb0] sm:$0xff] }
  0x16   : > { %3267 = vmatpush3.bf16.msra.mxu0 %v3264_v17  ;;  %605 = vperm.xlu1 %3712, %v557_v26   ;;  %v2314_v63 = vld [vmem:[%s4540_s4 + $0xb8] sm:$0xff]  ;;  %v368_v0 = vld [vmem:[%s3837_s14 + $0x28] sm:$0xff]  ;;  %v369_v1 = vld [vmem:[%s3837_s14 + $0x30] sm:$0xff] }
  0x17   : > { %3269 = vmatprep.subr.bf16.mxu0 %v3268_v22  ;;  %3389 = vmatprep.subr.bf16.mxu1 %v3388_v41  ;;  %v3296_v2 = vpack.c.bf16 %v2314_v63, %v2313_v62  ;;  %v370_v3 = vld [vmem:[%s3837_s14 + $0x38] sm:$0xff]  ;;  %v371_v4 = vld [vmem:[%s3837_s14 + $0x40] sm:$0xff]  ;;  %v372_v5 = vld [vmem:[%s3837_s14 + $0x48] sm:$0xff] }
  0x18   : > { %v373_v6 = vld [vmem:[%s3837_s14 + $0x50] sm:$0xff]  ;;  %v374_v7 = vld [vmem:[%s3837_s14 + $0x58] sm:$0xff]  ;;  %v375_v8 = vld [vmem:[%s3837_s14 + $0x60] sm:$0xff] }
  0x19   : > { %610 = vperm.xlu0 %3711, %v558_v38   ;;  %3391 = vmatpush3.bf16.msra.mxu1 %v3388_v41  ;;  %v376_v9 = vld [vmem:[%s3837_s14 + $0x68] sm:$0x3f]  ;;  %v2345_v10 = vld [vmem:[%s4540_s4 + $0x1b0] sm:$0xff]  ;;  %v2346_v11 = vld [vmem:[%s4540_s4 + $0x1b8] sm:$0xff]  ;;  %s3685_s14 = smul.u32 80, %s4550_s27 }
  0x1a   : > { %3271 = vmatpush3.bf16.msra.mxu0 %v3268_v22  ;;  %615 = vperm.xlu1 %3712, %v559_v39   ;;  %v3392_v12 = vpack.c.bf16 %v2346_v11, %v2345_v10  ;;  %v2315_v13 = vld [vmem:[%s4540_s4 + $0xc0] sm:$0xff]  ;;  %v2316_v14 = vld [vmem:[%s4540_s4 + $0xc8] sm:$0xff]  ;;  %v2317_v19 = vld [vmem:[%s4540_s4 + $0xd0] sm:$0xff] }
  0x1b   : > { %3273 = vmatprep.subr.bf16.mxu0 %v3272_v31  ;;  %v3300_v15 = vpack.c.bf16 %v2316_v14, %v2315_v13  ;;  %v2347_v16 = vld [vmem:[%s4540_s4 + $0x1c0] sm:$0xff]  ;;  %v2348_v17 = vld [vmem:[%s4540_s4 + $0x1c8] sm:$0xff]  ;;  %v2318_v20 = vld [vmem:[%s4540_s4 + $0xd8] sm:$0xff]  ;;  %s4515_s9 = scalar_lea.vmem %s4544_s8, %s3685_s14 }
  0x1c   : > { %3393 = vmatprep.subr.bf16.mxu1 %v3392_v12  ;;  %v3396_v18 = vpack.c.bf16 %v2348_v17, %v2347_v16  ;;  %v3304_v21 = vpack.c.bf16 %v2318_v20, %v2317_v19  ;;  %v2349_v22 = vld [vmem:[%s4540_s4 + $0x1d0] sm:$0xff]  ;;  %v2350_v23 = vld [vmem:[%s4540_s4 + $0x1d8] sm:$0xff]  ;;  %v2319_v25 = vld [vmem:[%s4540_s4 + $0xe0] sm:$0xff] }
  0x1d   : > { %620 = vperm.xlu0 %3711, %v560_v44   ;;  %3395 = vmatpush3.bf16.msra.mxu1 %v3392_v12  ;;  %v3400_v24 = vpack.c.bf16 %v2350_v23, %v2349_v22  ;;  %v2320_v26 = vld [vmem:[%s4540_s4 + $0xe8] sm:$0xff]  ;;  %v2351_v28 = vld [vmem:[%s4540_s4 + $0x1e0] sm:$0xff]  ;;  %v2322_v32 = vld [vmem:[%s4540_s4 + $0xf8] sm:$0xff] }
  0x1e   : > { %3275 = vmatpush3.bf16.msra.mxu0 %v3272_v31  ;;  %565 = vperm.xlu1 %3712, %v549_v45   ;;  %v3308_v27 = vpack.c.bf16 %v2320_v26, %v2319_v25  ;;  %v2352_v29 = vld [vmem:[%s4540_s4 + $0x1e8] sm:$0xff]  ;;  %v2321_v31 = vld [vmem:[%s4540_s4 + $0xf0] sm:$0xff]  ;;  %v2354_v35 = vld [vmem:[%s4540_s4 + $0x1f8] sm:$0xff] }
  0x1f   : > { %3277 = vmatprep.subr.bf16.mxu0 %v3276_v40  ;;  %3397 = vmatprep.subr.bf16.mxu1 %v3396_v18  ;;  %v3404_v30 = vpack.c.bf16 %v2352_v29, %v2351_v28  ;;  %v3312_v33 = vpack.c.bf16 %v2322_v32, %v2321_v31  ;;  %v2353_v34 = vld [vmem:[%s4540_s4 + $0x1f0] sm:$0xff]  ;;  %v671_v37 = vld [vmem:[%s4540_s4] sm:$0xff]  ;;  %v672_v38 = vld [vmem:[%s4540_s4 + $0x8] sm:$0xff] }
  0x20   : > { %v3408_v36 = vpack.c.bf16 %v2354_v35, %v2353_v34  ;;  %v4015_v39 = vpack.c.bf16 %v672_v38, %v671_v37  ;;  %v2356_v41 = vld [vmem:[%s4540_s4 + $0x208] sm:$0xff]  ;;  %v673_v20 = vld [vmem:[%s4540_s4 + $0x10] sm:$0xff]  ;;  %v2358_v32 = vld [vmem:[%s4540_s4 + $0x218] sm:$0xff] }
  0x21   : > { %625 = vperm.xlu0 %3711, %v561_v49   ;;  %3399 = vmatpush3.bf16.msra.mxu1 %v3396_v18  ;;  %v4034_v49 = vld [vmem:[%s4539_s3] ss:$0 sm:$0xff]  ;;  %v2357_v31 = vld [vmem:[%s4540_s4 + $0x210] sm:$0xff] }
  0x22   : > { %3279 = vmatpush3.bf16.msra.mxu0 %v3276_v40  ;;  %630 = vperm.xlu1 %3712, %v562_v50   ;;  %v2355_v40 = vld [vmem:[%s4540_s4 + $0x200] sm:$0xff] }
  0x23   : > { %3281 = vmatprep.subr.bf16.mxu0 %v3280_v46  ;;  %3401 = vmatprep.subr.bf16.mxu1 %v3400_v24  ;;  %v4024_v42 = vpack.c.bf16 %v2356_v41, %v2355_v40  ;;  %v675_v41 = vld [vmem:[%s4540_s4 + $0x20] sm:$0xff] }
  0x25   : > { %3403 = vmatpush3.bf16.msra.mxu1 %v3400_v24 }
  0x26   : > { %3283 = vmatpush3.bf16.msra.mxu0 %v3280_v46  ;;  %3405 = vmatprep.subr.bf16.mxu1 %v3404_v30 }
  0x27   : > { %3285 = vmatprep.subr.bf16.mxu0 %v3284_v51 }
  0x29   : > { %2762 = vmatmul.mubr.f32.vlgmr.msra.gmra.mrb[0].mxu0 %v364_v54  ;;  %3407 = vmatpush3.bf16.msra.mxu1 %v3404_v30 }
  0x2a   : > { %2764 = vmatprep.mubr.f32.mxu0 %v365_v55  ;;  %3287 = vmatpush3.bf16.msra.mxu0 %v3284_v51 }
  0x2b   : > { %3289 = vmatprep.subr.bf16.mxu0 %v3288_v56  ;;  %3409 = vmatprep.subr.bf16.mxu1 %v3408_v36 }
  0x2d   : > { %2765 = vmatmul.mubr.f32.gmra.mrb[2].mxu0 %v366_v59  ;;  %3411 = vmatpush3.bf16.msra.mxu1 %v3408_v36 }
  0x2e   : > { %2767 = vmatprep.mubr.f32.mxu0 %v367_v60  ;;  %3291 = vmatpush3.bf16.msra.mxu0 %v3288_v56 }
  0x2f   : > { %3293 = vmatprep.subr.bf16.mxu0 %v3292_v61  ;;  %3413 = vmatprep.subr.bf16.mxu1 %v4024_v42 }
  0x31   : > { %2768 = vmatmul.mubr.f32.gmra.mrb[4].mxu0 %v368_v0 }
  0x32   : > { %2770 = vmatprep.mubr.f32.mxu0 %v369_v1  ;;  %3295 = vmatpush3.bf16.msra.mxu0 %v3292_v61 }
  0x33   : > { %3297 = vmatprep.subr.bf16.mxu0 %v3296_v2 }
  0x35   : > { %2771 = vmatmul.mubr.f32.gmra.mrb[6].mxu0 %v370_v3 }
  0x36   : > { %2773 = vmatprep.mubr.f32.mxu0 %v371_v4  ;;  %3299 = vmatpush3.bf16.msra.mxu0 %v3296_v2 }
  0x37   : > { %3301 = vmatprep.subr.bf16.mxu0 %v3300_v15 }
  0x39   : > { %2774 = vmatmul.mubr.f32.gmra.mrb[8].mxu0 %v372_v5 }
  0x3a   : > { %2776 = vmatprep.mubr.f32.mxu0 %v373_v6  ;;  %3303 = vmatpush3.bf16.msra.mxu0 %v3300_v15 }
  0x3b   : > { %3305 = vmatprep.subr.bf16.mxu0 %v3304_v21 }
  0x3d   : > { %2777 = vmatmul.mubr.f32.gmra.mrb[10].mxu0 %v374_v7 }
  0x3e   : > { %2779 = vmatprep.mubr.f32.mxu0 %v375_v8  ;;  %3307 = vmatpush3.bf16.msra.mxu0 %v3304_v21  ;;  %v674_v21 = vld [vmem:[%s4540_s4 + $0x18] sm:$0xff] }
  0x3f   : > { %3309 = vmatprep.subr.bf16.mxu0 %v3308_v27  ;;  %v3320_v30 = vpack.c.bf16 %v674_v21, %v673_v20 }
  0x41   : > { %2780 = vmatmul.mubr.f32.gmra.mrb[12].mxu0 %v376_v9 }
  0x42   : > { %3311 = vmatpush3.bf16.msra.mxu0 %v3308_v27 }
  0x43   : > { %3313 = vmatprep.subr.bf16.mxu0 %v3312_v33 }
  0x46   : > { %3315 = vmatpush3.bf16.msra.mxu0 %v3312_v33 }
  0x47   : > { %3317 = vmatprep.subr.bf16.mxu0 %v4015_v39 }
  0x88   : > { %v571_v47 = vpop.permute.xlu0 %570 }
  0x89   : > { %v581_v43 = vpop.permute.xlu1 %580 }
  0x8c   : > { %v576_v50 = vpop.permute.xlu0 %575 }
  0x8d   : > { %v586_v44 = vpop.permute.xlu1 %585 }
  0x90   : > { %v591_v59 = vpop.permute.xlu0 %590 }
  0x91   : > { %v596_v45 = vpop.permute.xlu1 %595 }
  0x94   : > { %v601_v9 = vpop.permute.xlu0 %600 }
  0x95   : > { %v4027_v46 = vpop.permute.xlu1 %605 }
  0x98   : > { %v611_v24 = vpop.permute.xlu0 %610 }
  0x99   : > { %v4029_v48 = vpop.permute.xlu1 %615 }
  0x9d   : > { %v566_v56 = vpop.permute.xlu1 %565 }
  0xfc   : > { %v2763_v51 = vpop.f32.mrb[0].mxu0 }
  0xfd   : > { %v472_v52 = vadd.f32 %v2763_v51, %v4034_v49  ;;  %v466_v53 = vpop.f32.mrb[1].mxu0 }
  0xfe   : > { %v467_v54 = vadd.f32 %v4034_v49, %v466_v53  ;;  %v2359_v53 = vld [vmem:[%s4540_s4 + $0x220] sm:$0xff] }
  0xff   : > { %v536_v55 = vmax.f32 %v472_v52, 0.0 }
 0x100   : > { %v535_v57 = vmax.f32 %v467_v54, 0.0  ;;  %v2766_v58 = vpop.f32.mrb[2].mxu0  ;;  %v2360_v54 = vld [vmem:[%s4540_s4 + $0x228] sm:$0xff] }
 0x101   : > { %v4038_v60 = vmul.f32 %v571_v47, %v536_v55  ;;  %v482_v61 = vadd.f32 %v2766_v58, %v4034_v49  ;;  %v476_v62 = vpop.f32.mrb[3].mxu0 }
 0x102   : > { %v4041_v63 = vmul.f32 %v566_v56, %v535_v57  ;;  %v477_v0 = vadd.f32 %v4034_v49, %v476_v62 }
 0x103   : > { %648 = vst [vmem:[#allocation2 + $0x8] sm:$0xff] %v4038_v60  ;;  %v538_v1 = vmax.f32 %v482_v61, 0.0 }
 0x104   : > { %647 = vst [vmem:[#allocation2] sm:$0xff] %v4041_v63  ;;  %v537_v2 = vmax.f32 %v477_v0, 0.0  ;;  %v2769_v3 = vpop.f32.mrb[4].mxu0  ;;  %v677_v0 = vld [vmem:[%s4540_s4 + $0x30] sm:$0xff] }
 0x105   : > { %v4046_v4 = vmul.f32 %v581_v43, %v538_v1  ;;  %v492_v5 = vadd.f32 %v2769_v3, %v4034_v49  ;;  %v486_v6 = vpop.f32.mrb[5].mxu0  ;;  %v676_v43 = vld [vmem:[%s4540_s4 + $0x28] sm:$0xff]  ;;  %v3420_v3 = vpack.c.bf16 %v2360_v54, %v2359_v53 }
 0x106   : > { %v4049_v7 = vmul.f32 %v576_v50, %v537_v2  ;;  %v487_v8 = vadd.f32 %v4034_v49, %v486_v6  ;;  %v3416_v50 = vpack.c.bf16 %v2358_v32, %v2357_v31  ;;  %v3324_v58 = vpack.c.bf16 %v676_v43, %v675_v41  ;;  %v681_v31 = vld [vmem:[%s4540_s4 + $0x50] sm:$0xff]  ;;  %v2368_v53 = vld [vmem:[%s4540_s4 + $0x268] sm:$0xff] }
 0x107   : > { %650 = vst [vmem:[#allocation2 + $0x18] sm:$0xff] %v4046_v4  ;;  %v540_v10 = vmax.f32 %v492_v5, 0.0 }
 0x108   : > { %649 = vst [vmem:[#allocation2 + $0x10] sm:$0xff] %v4049_v7  ;;  %v539_v11 = vmax.f32 %v487_v8, 0.0  ;;  %v2772_v12 = vpop.f32.mrb[6].mxu0  ;;  %v2361_v8 = vld [vmem:[%s4540_s4 + $0x230] sm:$0xff] }
 0x109   : > { %v4054_v13 = vmul.f32 %v591_v59, %v540_v10  ;;  %v502_v14 = vadd.f32 %v2772_v12, %v4034_v49  ;;  %v496_v15 = vpop.f32.mrb[7].mxu0 }
 0x10a   : > { %v4057_v16 = vmul.f32 %v586_v44, %v539_v11  ;;  %v497_v17 = vadd.f32 %v4034_v49, %v496_v15 }
 0x10b   : > { %652 = vst [vmem:[#allocation2 + $0x28] sm:$0xff] %v4054_v13  ;;  %v542_v18 = vmax.f32 %v502_v14, 0.0  ;;  %v687_v19 = vld [vmem:[#allocation2 + $0x1] sm:$0xff] }
 0x10c   : > { %651 = vst [vmem:[#allocation2 + $0x20] sm:$0xff] %v4057_v16  ;;  %v541_v22 = vmax.f32 %v497_v17, 0.0  ;;  %v2775_v23 = vpop.f32.mrb[8].mxu0  ;;  %2814 = vmatprep.mubr.f32.mxu0 %v687_v19  ;;  %v679_v17 = vld [vmem:[%s4540_s4 + $0x40] sm:$0xff] }
 0x10d   : > { %v4068_v25 = vmul.f32 %v601_v9, %v542_v18  ;;  %v512_v26 = vadd.f32 %v2775_v23, %v4034_v49  ;;  %v506_v27 = vpop.f32.mrb[9].mxu0  ;;  %v2362_v9 = vld [vmem:[%s4540_s4 + $0x238] sm:$0xff]  ;;  %v680_v18 = vld [vmem:[%s4540_s4 + $0x48] sm:$0xff] }
 0x10e   : > { %v4071_v28 = vmul.f32 %v596_v45, %v541_v22  ;;  %v507_v29 = vadd.f32 %v4034_v49, %v506_v27  ;;  %v3424_v20 = vpack.c.bf16 %v2362_v9, %v2361_v8  ;;  %v2363_v22 = vld [vmem:[%s4540_s4 + $0x240] sm:$0xff]  ;;  %v2364_v23 = vld [vmem:[%s4540_s4 + $0x248] sm:$0xff]  ;;  %v2373_v9 = vld [vmem:[%s4540_s4 + $0x290] sm:$0xff] }
 0x10f   : > { %654 = vst [vmem:[#allocation2 + $0x38] sm:$0xff] %v4068_v25  ;;  %v544_v33 = vmax.f32 %v512_v26, 0.0  ;;  %v688_v34 = vld [vmem:[#allocation2 + $0x9] sm:$0xff]  ;;  %v689_v36 = vld [vmem:[#allocation2 + $0x11] sm:$0xff]  ;;  %v3428_v32 = vpack.c.bf16 %v2364_v23, %v2363_v22 }
 0x110   : > { %v4081_v35 = vld [vmem:[#allocation2 + $0xa] sm:$0xff]  ;;  %653 = vst [vmem:[#allocation2 + $0x30] sm:$0xff] %v4071_v28  ;;  %v543_v37 = vmax.f32 %v507_v29, 0.0  ;;  %v2778_v38 = vpop.f32.mrb[10].mxu0  ;;  %2815 = vmatmul.mubr.f32.vlgmr.msra.gmra.mrb[14].mxu0 %v688_v34  ;;  %v4085_v40 = vld [vmem:[#allocation2 + $0x12] sm:$0xff]  ;;  %v3332_v29 = vpack.c.bf16 %v680_v18, %v679_v17  ;;  %v2375_v18 = vld [vmem:[%s4540_s4 + $0x2a0] sm:$0xff] }
 0x111   : > { %2955 = vmatprep.mubr.f32.mxu1 %v4081_v35  ;;  %v4093_v44 = vmul.f32 %v611_v24, %v544_v33  ;;  %v522_v45 = vadd.f32 %v2778_v38, %v4034_v49  ;;  %3319 = vmatpush3.bf16.msra.mxu0 %v4015_v39  ;;  %v516_v47 = vpop.f32.mrb[11].mxu0  ;;  %v621_v39 = vpop.permute.xlu0 %620  ;;  %v682_v33 = vld [vmem:[%s4540_s4 + $0x58] sm:$0xff]  ;;  %v2365_v34 = vld [vmem:[%s4540_s4 + $0x250] sm:$0xff]  ;;  %v684_v38 = vld [vmem:[%s4540_s4 + $0x68] sm:$0xff] }
 0x112   : > { %2817 = vmatprep.mubr.f32.mxu0 %v689_v36  ;;  %v4098_v51 = vmul.f32 %v4027_v46, %v543_v37  ;;  %v517_v52 = vadd.f32 %v4034_v49, %v516_v47  ;;  %2956 = vmatmul.mubr.f32.vlgmr.msra.gmra.mrb[0].mxu1 %v4085_v40  ;;  %v2366_v36 = vld [vmem:[%s4540_s4 + $0x258] sm:$0xff]  ;;  %v683_v37 = vld [vmem:[%s4540_s4 + $0x60] sm:$0xff]  ;;  %v3336_v47 = vpack.c.bf16 %v682_v33, %v681_v31  ;;  %v1248_v54 = vld [vmem:[#allocation2 + $0xb] sm:$0xff] }
 0x113   : > { %3321 = vmatprep.subr.bf16.mxu0 %v3320_v30  ;;  %656 = vst [vmem:[#allocation2 + $0x48] sm:$0xff] %v4093_v44  ;;  %v546_v55 = vmax.f32 %v522_v45, 0.0  ;;  %3415 = vmatpush3.bf16.msra.mxu1 %v4024_v42  ;;  %v690_v46 = vld [vmem:[#allocation2 + $0x19] sm:$0xff]  ;;  %v691_v57 = vld [vmem:[#allocation2 + $0x21] sm:$0xff] }
 0x114   : > { %v4110_v56 = vld [vmem:[#allocation2 + $0x1a] sm:$0xff]  ;;  %655 = vst [vmem:[#allocation2 + $0x40] sm:$0xff] %v4098_v51  ;;  %v545_v59 = vmax.f32 %v517_v52, 0.0  ;;  %v2781_v61 = vpop.f32.mrb[12].mxu0  ;;  %2818 = vmatmul.mubr.f32.gmra.mrb[16].mxu0 %v690_v46  ;;  %v4114_v62 = vld [vmem:[#allocation2 + $0x22] sm:$0xff]  ;;  %3417 = vmatprep.subr.bf16.mxu1 %v3416_v50 }
 0x115   : > { %2958 = vmatprep.mubr.f32.mxu1 %v4110_v56  ;;  %v678_v42 = vld [vmem:[%s4540_s4 + $0x38] sm:$0xff]  ;;  %v644_v1 = vmul.f32 %v621_v39, %v546_v55  ;;  %3323 = vmatpush3.bf16.msra.mxu0 %v3320_v30  ;;  %v526_v2 = vpop.f32.mrb[13].mxu0  ;;  %v626_v19 = vpop.permute.xlu0 %625  ;;  %v2367_v52 = vld [vmem:[%s4540_s4 + $0x260] sm:$0xff]  ;;  %v3340_v39 = vpack.c.bf16 %v684_v38, %v683_v37  ;;  %v685_v55 = vld [vmem:[%s4540_s4 + $0x70] sm:$0xff] }
 0x116   : > { %v643_v5 = vmul.f32 %v4029_v48, %v545_v59  ;;  %v527_v6 = vadd.f32 %v4034_v49, %v526_v2  ;;  %2820 = vmatprep.mubr.f32.mxu0 %v691_v57  ;;  %2959 = vmatmul.mubr.f32.gmra.mrb[2].mxu1 %v4114_v62  ;;  %v3328_v12 = vpack.c.bf16 %v678_v42, %v677_v0  ;;  %v631_v49 = vpop.permute.xlu1 %630  ;;  %v686_v46 = vld [vmem:[%s4540_s4 + $0x78] sm:$0xff]  ;;  %v2323_v61 = vld [vmem:[%s4540_s4 + $0x100] sm:$0xff]  ;;  %v2324_v0 = vld [vmem:[%s4540_s4 + $0x108] sm:$0xff] }
 0x117   : > { %658 = vst [vmem:[#allocation2 + $0x58] sm:$0xff] %v644_v1  ;;  %3419 = vmatpush3.bf16.msra.mxu1 %v3416_v50  ;;  %3325 = vmatprep.subr.bf16.mxu0 %v3324_v58  ;;  %v692_v10 = vld [vmem:[#allocation2 + $0x29] sm:$0xff]  ;;  %v693_v48 = vld [vmem:[#allocation2 + $0x31] sm:$0xff]  ;;  %v3432_v50 = vpack.c.bf16 %v2366_v36, %v2365_v34  ;;  %v3436_v57 = vpack.c.bf16 %v2368_v53, %v2367_v52  ;;  %v2371_v1 = vld [vmem:[%s4540_s4 + $0x280] sm:$0xff] }
 0x118   : > { %v4131_v11 = vld [vmem:[#allocation2 + $0x2a] sm:$0xff]  ;;  %657 = vst [vmem:[#allocation2 + $0x50] sm:$0xff] %v643_v5  ;;  %v547_v14 = vmax.f32 %v527_v6, 0.0  ;;  %2821 = vmatmul.mubr.f32.gmra.mrb[18].mxu0 %v692_v10  ;;  %v4134_v15 = vld [vmem:[#allocation2 + $0x32] sm:$0xff]  ;;  %3421 = vmatprep.subr.bf16.mxu1 %v3420_v3  ;;  %v3344_v59 = vpack.c.bf16 %v686_v46, %v685_v55  ;;  %v2379_v34 = vld [vmem:[%s4540_s4 + $0x2c0] sm:$0xff] }
 0x119   : > { %2961 = vmatprep.mubr.f32.mxu1 %v4131_v11  ;;  %3327 = vmatpush3.bf16.msra.mxu0 %v3324_v58  ;;  %v2370_v58 = vld [vmem:[%s4540_s4 + $0x278] sm:$0xff]  ;;  %v2372_v2 = vld [vmem:[%s4540_s4 + $0x288] sm:$0xff]  ;;  %v2325_v5 = vld [vmem:[%s4540_s4 + $0x110] sm:$0xff] }
 0x11a   : > { %v645_v21 = vmul.f32 %v626_v19, %v547_v14  ;;  %2823 = vmatprep.mubr.f32.mxu0 %v693_v48  ;;  %2962 = vmatmul.mubr.f32.gmra.mrb[4].mxu1 %v4134_v15  ;;  %v2326_v6 = vld [vmem:[%s4540_s4 + $0x118] sm:$0xff]  ;;  %v3444_v8 = vpack.c.bf16 %v2372_v2, %v2371_v1  ;;  %v2328_v49 = vld [vmem:[%s4540_s4 + $0x128] sm:$0xff]  ;;  %v2383_v46 = vld [vmem:[%s4540_s4 + $0x2e0] sm:$0xff] }
 0x11b   : > { %3423 = vmatpush3.bf16.msra.mxu1 %v3420_v3  ;;  %3329 = vmatprep.subr.bf16.mxu0 %v3328_v12  ;;  %v694_v24 = vld [vmem:[#allocation2 + $0x39] sm:$0xff]  ;;  %v695_v27 = vld [vmem:[#allocation2 + $0x41] sm:$0xff]  ;;  %v3348_v3 = vpack.c.bf16 %v2324_v0, %v2323_v61  ;;  %v3352_v48 = vpack.c.bf16 %v2326_v6, %v2325_v5  ;;  %v2385_v0 = vld [vmem:[%s4540_s4 + $0x2f0] sm:$0xff] }
 0x11c   : > { %v4149_v26 = vld [vmem:[#allocation2 + $0x3a] sm:$0xff]  ;;  %659 = vst [vmem:[#allocation2 + $0x60] sm:$0xff] %v645_v21  ;;  %2824 = vmatmul.mubr.f32.gmra.mrb[20].mxu0 %v694_v24  ;;  %v4152_v30 = vld [vmem:[#allocation2 + $0x42] sm:$0xff]  ;;  %3425 = vmatprep.subr.bf16.mxu1 %v3424_v20  ;;  %v2377_v24 = vld [vmem:[%s4540_s4 + $0x2b0] sm:$0xff] }
 0x11d   : > { %2964 = vmatprep.mubr.f32.mxu1 %v4149_v26  ;;  %3331 = vmatpush3.bf16.msra.mxu0 %v3328_v12  ;;  %v2374_v10 = vld [vmem:[%s4540_s4 + $0x298] sm:$0xff]  ;;  %v2327_v12 = vld [vmem:[%s4540_s4 + $0x120] sm:$0xff]  ;;  %v2376_v19 = vld [vmem:[%s4540_s4 + $0x2a8] sm:$0xff] }
 0x11e   : > { %2826 = vmatprep.mubr.f32.mxu0 %v695_v27  ;;  %2965 = vmatmul.mubr.f32.gmra.mrb[6].mxu1 %v4152_v30  ;;  %v3448_v14 = vpack.c.bf16 %v2374_v10, %v2373_v9  ;;  %v1249_v17 = vld [vmem:[#allocation2 + $0x13] sm:$0xff]  ;;  %v3356_v21 = vpack.c.bf16 %v2328_v49, %v2327_v12  ;;  %v3452_v22 = vpack.c.bf16 %v2376_v19, %v2375_v18  ;;  %v1251_v23 = vld [vmem:[#allocation2 + $0x23] sm:$0xff]  ;;  %v1254_v37 = vld [vmem:[#allocation2 + $0x3b] sm:$0xff] }
 0x11f   : > { %3427 = vmatpush3.bf16.msra.mxu1 %v3424_v20  ;;  %3333 = vmatprep.subr.bf16.mxu0 %v3332_v29  ;;  %v696_v41 = vld [vmem:[#allocation2 + $0x49] sm:$0xff]  ;;  %v1105_v45 = vld [vmem:[#allocation2 + $0x52] sm:$0xff]  ;;  %v1250_v20 = vld [vmem:[#allocation2 + $0x1b] sm:$0xff] }
 0x120   : > { %v4173_v43 = vld [vmem:[#allocation2 + $0x4a] sm:$0xff]  ;;  %2827 = vmatmul.mubr.f32.gmra.mrb[22].mxu0 %v696_v41  ;;  %3429 = vmatprep.subr.bf16.mxu1 %v3428_v32  ;;  %v2378_v27 = vld [vmem:[%s4540_s4 + $0x2b8] sm:$0xff]  ;;  %v2391_v12 = vld [vmem:[%s4540_s4 + $0x320] sm:$0xff] }
 0x121   : > { %2967 = vmatprep.mubr.f32.mxu1 %v4173_v43  ;;  %3335 = vmatpush3.bf16.msra.mxu0 %v3332_v29  ;;  %v1252_v29 = vld [vmem:[#allocation2 + $0x2b] sm:$0xff]  ;;  %v1253_v33 = vld [vmem:[#allocation2 + $0x33] sm:$0xff] }
 0x122   : > { %2861 = vmatprep.mubr.f32.mxu0 %v4041_v63  ;;  %2968 = vmatmul.mubr.f32.gmra.mrb[8].mxu1 %v1105_v45  ;;  %v2369_v63 = vld [vmem:[%s4540_s4 + $0x270] sm:$0xff]  ;;  %v2380_v36 = vld [vmem:[%s4540_s4 + $0x2c8] sm:$0xff]  ;;  %v2390_v9 = vld [vmem:[%s4540_s4 + $0x318] sm:$0xff] }
 0x123   : > { %3431 = vmatpush3.bf16.msra.mxu1 %v3428_v32  ;;  %3002 = vmatprep.mubr.f32.mxu1 %v1248_v54  ;;  %v3440_v42 = vpack.c.bf16 %v2370_v58, %v2369_v63  ;;  %v3456_v32 = vpack.c.bf16 %v2378_v27, %v2377_v24  ;;  %v3460_v41 = vpack.c.bf16 %v2380_v36, %v2379_v34  ;;  %v1255_v45 = vld [vmem:[#allocation2 + $0x43] sm:$0xff]  ;;  %v1256_v52 = vld [vmem:[#allocation2 + $0x4b] sm:$0xff]  ;;  %v1257_v55 = vld [vmem:[#allocation2 + $0x53] sm:$0xff] }
 0x124   : > { %3337 = vmatprep.subr.bf16.mxu0 %v3336_v47  ;;  %3433 = vmatprep.subr.bf16.mxu1 %v3432_v50  ;;  %v944_v54 = vld [vmem:[#allocation2 + $0x2] sm:$0xff]  ;;  %v1400_v63 = vld [vmem:[#allocation2 + $0xc] sm:$0xff]  ;;  %v2394_v18 = vld [vmem:[%s4540_s4 + $0x338] sm:$0xff] }
 0x125   : > { %3339 = vmatpush3.bf16.msra.mxu0 %v3336_v47  ;;  %v2381_v47 = vld [vmem:[%s4540_s4 + $0x2d0] sm:$0xff]  ;;  %v2388_v5 = vld [vmem:[%s4540_s4 + $0x308] sm:$0xff]  ;;  %v2406_v36 = vld [vmem:[%s4540_s4 + $0x398] sm:$0xff] }
 0x126   : > { %3341 = vmatprep.subr.bf16.mxu0 %v3340_v39  ;;  %v2392_v49 = vld [vmem:[%s4540_s4 + $0x328] sm:$0xff]  ;;  %v1409_v24 = vld [vmem:[#allocation2 + $0x54] sm:$0xff] }
 0x127   : > { %3435 = vmatpush3.bf16.msra.mxu1 %v3432_v50  ;;  %v2382_v50 = vld [vmem:[%s4540_s4 + $0x2d8] sm:$0xff]  ;;  %v1404_v19 = vld [vmem:[#allocation2 + $0x2c] sm:$0xff] }
 0x128   : > { %3437 = vmatprep.subr.bf16.mxu1 %v3436_v57  ;;  %v2400_v27 = vld [vmem:[%s4540_s4 + $0x368] sm:$0xff]  ;;  %v2405_v34 = vld [vmem:[%s4540_s4 + $0x390] sm:$0xff] }
 0x129   : > { %3343 = vmatpush3.bf16.msra.mxu0 %v3340_v39  ;;  %v3464_v39 = vpack.c.bf16 %v2382_v50, %v2381_v47  ;;  %v2411_v50 = vld [vmem:[%s4540_s4 + $0x3c0] sm:$0xff] }
 0x12a   : > { %3345 = vmatprep.subr.bf16.mxu0 %v3344_v59 }
 0x12b   : > { %3439 = vmatpush3.bf16.msra.mxu1 %v3436_v57  ;;  %v2384_v57 = vld [vmem:[%s4540_s4 + $0x2e8] sm:$0xff] }
 0x12c   : > { %3441 = vmatprep.subr.bf16.mxu1 %v3440_v42  ;;  %v3468_v61 = vpack.c.bf16 %v2384_v57, %v2383_v46  ;;  %v2416_v46 = vld [vmem:[%s4540_s4 + $0x3e8] sm:$0xff]  ;;  %v1704_v57 = vld [vmem:[#allocation2 + $0x15] sm:$0xff] }
 0x12d   : > { %3347 = vmatpush3.bf16.msra.mxu0 %v3344_v59  ;;  %v2338_v59 = vld [vmem:[%s4540_s4 + $0x178] sm:$0xff] }
 0x12e   : > { %3349 = vmatprep.subr.bf16.mxu0 %v3348_v3 }
 0x12f   : > { %3443 = vmatpush3.bf16.msra.mxu1 %v3440_v42  ;;  %v2386_v42 = vld [vmem:[%s4540_s4 + $0x2f8] sm:$0xff] }
 0x130   : > { %2862 = vmatmul.mubr.f32.vlgmr.msra.gmra.mrb[14].mxu0 %v4038_v60  ;;  %3445 = vmatprep.subr.bf16.mxu1 %v3444_v8  ;;  %v2329_v60 = vld [vmem:[%s4540_s4 + $0x130] sm:$0xff]  ;;  %v3472_v2 = vpack.c.bf16 %v2386_v42, %v2385_v0  ;;  %v2420_v0 = vld [vmem:[%s4540_s4 + $0x408] sm:$0xff] }
 0x131   : > { %2864 = vmatprep.mubr.f32.mxu0 %v4049_v7  ;;  %3351 = vmatpush3.bf16.msra.mxu0 %v3348_v3  ;;  %v2330_v7 = vld [vmem:[%s4540_s4 + $0x138] sm:$0xff]  ;;  %v2387_v3 = vld [vmem:[%s4540_s4 + $0x300] sm:$0xff] }
 0x132   : > { %3003 = vmatmul.mubr.f32.vlgmr.msra.gmra.mrb[0].mxu1 %v1249_v17  ;;  %3353 = vmatprep.subr.bf16.mxu0 %v3352_v48  ;;  %v3360_v31 = vpack.c.bf16 %v2330_v7, %v2329_v60  ;;  %v3476_v6 = vpack.c.bf16 %v2388_v5, %v2387_v3  ;;  %v2393_v17 = vld [vmem:[%s4540_s4 + $0x330] sm:$0xff]  ;;  %v1406_v60 = vld [vmem:[#allocation2 + $0x3c] sm:$0xff] }
 0x133   : > { %3005 = vmatprep.mubr.f32.mxu1 %v1250_v20  ;;  %3447 = vmatpush3.bf16.msra.mxu1 %v3444_v8  ;;  %v2389_v8 = vld [vmem:[%s4540_s4 + $0x310] sm:$0xff]  ;;  %v2395_v20 = vld [vmem:[%s4540_s4 + $0x340] sm:$0xff] }
 0x134   : > { %2865 = vmatmul.mubr.f32.gmra.mrb[16].mxu0 %v4046_v4  ;;  %3449 = vmatprep.subr.bf16.mxu1 %v3448_v14  ;;  %v2331_v4 = vld [vmem:[%s4540_s4 + $0x140] sm:$0xff]  ;;  %v3480_v10 = vpack.c.bf16 %v2390_v9, %v2389_v8  ;;  %v2397_v7 = vld [vmem:[%s4540_s4 + $0x350] sm:$0xff]  ;;  %v2424_v8 = vld [vmem:[%s4540_s4 + $0x428] sm:$0xff] }
 0x135   : > { %2867 = vmatprep.mubr.f32.mxu0 %v4057_v16  ;;  %3355 = vmatpush3.bf16.msra.mxu0 %v3352_v48  ;;  %v2332_v16 = vld [vmem:[%s4540_s4 + $0x148] sm:$0xff]  ;;  %v1401_v48 = vld [vmem:[#allocation2 + $0x14] sm:$0xff]  ;;  %v1705_v5 = vld [vmem:[#allocation2 + $0x1d] sm:$0xff] }
 0x136   : > { %3006 = vmatmul.mubr.f32.gmra.mrb[2].mxu1 %v1251_v23  ;;  %3357 = vmatprep.subr.bf16.mxu0 %v3356_v21  ;;  %v3364_v38 = vpack.c.bf16 %v2332_v16, %v2331_v4  ;;  %v1408_v23 = vld [vmem:[#allocation2 + $0x4c] sm:$0xff]  ;;  %v2403_v16 = vld [vmem:[%s4540_s4 + $0x380] sm:$0xff] }
 0x137   : > { %3008 = vmatprep.mubr.f32.mxu1 %v1252_v29  ;;  %3451 = vmatpush3.bf16.msra.mxu1 %v3448_v14  ;;  %v4320_v14 = vld [vmem:[#allocation2 + $0x1c] sm:$0xff]  ;;  %v1706_v9 = vld [vmem:[#allocation2 + $0x25] sm:$0xff] }
 0x138   : > { %2868 = vmatmul.mubr.f32.gmra.mrb[18].mxu0 %v4054_v13  ;;  %3453 = vmatprep.subr.bf16.mxu1 %v3452_v22  ;;  %v2333_v13 = vld [vmem:[%s4540_s4 + $0x150] sm:$0xff] }
 0x139   : > { %2870 = vmatprep.mubr.f32.mxu0 %v4071_v28  ;;  %3359 = vmatpush3.bf16.msra.mxu0 %v3356_v21  ;;  %v2334_v28 = vld [vmem:[%s4540_s4 + $0x158] sm:$0xff]  ;;  %v2396_v21 = vld [vmem:[%s4540_s4 + $0x348] sm:$0xff] }
 0x13a   : > { %3009 = vmatmul.mubr.f32.gmra.mrb[4].mxu1 %v1253_v33  ;;  %3361 = vmatprep.subr.bf16.mxu0 %v3360_v31  ;;  %v3368_v53 = vpack.c.bf16 %v2334_v28, %v2333_v13  ;;  %v2408_v13 = vld [vmem:[%s4540_s4 + $0x3a8] sm:$0xff] }
 0x13b   : > { %3011 = vmatprep.mubr.f32.mxu1 %v1254_v37  ;;  %3455 = vmatpush3.bf16.msra.mxu1 %v3452_v22  ;;  %v2398_v22 = vld [vmem:[%s4540_s4 + $0x358] sm:$0xff]  ;;  %v3512_v37 = vpack.c.bf16 %v2406_v36, %v2405_v34 }
 0x13c   : > { %2871 = vmatmul.mubr.f32.gmra.mrb[20].mxu0 %v4068_v25  ;;  %3457 = vmatprep.subr.bf16.mxu1 %v3456_v32  ;;  %v2335_v25 = vld [vmem:[%s4540_s4 + $0x160] sm:$0xff]  ;;  %v2038_v34 = vld [vmem:[%s4542_s6 + $0x18] sm:$0xff] }
 0x13d   : > { %2873 = vmatprep.mubr.f32.mxu0 %v4098_v51  ;;  %3363 = vmatpush3.bf16.msra.mxu0 %v3360_v31  ;;  %v2336_v51 = vld [vmem:[%s4540_s4 + $0x168] sm:$0xff]  ;;  %v2402_v31 = vld [vmem:[%s4540_s4 + $0x378] sm:$0xff] }
 0x13e   : > { %3012 = vmatmul.mubr.f32.gmra.mrb[6].mxu1 %v1255_v45  ;;  %3365 = vmatprep.subr.bf16.mxu0 %v3364_v38  ;;  %v3372_v58 = vpack.c.bf16 %v2336_v51, %v2335_v25  ;;  %v2410_v45 = vld [vmem:[%s4540_s4 + $0x3b8] sm:$0xff]  ;;  %v2413_v25 = vld [vmem:[%s4540_s4 + $0x3d0] sm:$0xff] }
 0x13f   : > { %3014 = vmatprep.mubr.f32.mxu1 %v1256_v52  ;;  %3459 = vmatpush3.bf16.msra.mxu1 %v3456_v32  ;;  %v2404_v32 = vld [vmem:[%s4540_s4 + $0x388] sm:$0xff]  ;;  %v2414_v51 = vld [vmem:[%s4540_s4 + $0x3d8] sm:$0xff] }
 0x140   : > { %2874 = vmatmul.mubr.f32.gmra.mrb[22].mxu0 %v4093_v44  ;;  %3461 = vmatprep.subr.bf16.mxu1 %v3460_v41  ;;  %v2337_v44 = vld [vmem:[%s4540_s4 + $0x170] sm:$0xff]  ;;  %v3508_v33 = vpack.c.bf16 %v2404_v32, %v2403_v16  ;;  %v2412_v52 = vld [vmem:[%s4540_s4 + $0x3c8] sm:$0xff] }
 0x141   : > { %3367 = vmatpush3.bf16.msra.mxu0 %v3364_v38  ;;  %2908 = vmatprep.mubr.f32.mxu0 %v944_v54  ;;  %v3376_v1 = vpack.c.bf16 %v2338_v59, %v2337_v44  ;;  %v2407_v38 = vld [vmem:[%s4540_s4 + $0x3a0] sm:$0xff]  ;;  %v3528_v54 = vpack.c.bf16 %v2414_v51, %v2413_v25  ;;  %v2418_v44 = vld [vmem:[%s4540_s4 + $0x3f8] sm:$0xff]  ;;  %v2037_v16 = vld [vmem:[%s4542_s6 + $0x10] sm:$0xff] }
 0x142   : > { %3015 = vmatmul.mubr.f32.gmra.mrb[8].mxu1 %v1257_v55  ;;  %3369 = vmatprep.subr.bf16.mxu0 %v3368_v53  ;;  %v3516_v28 = vpack.c.bf16 %v2408_v13, %v2407_v38  ;;  %v2415_v55 = vld [vmem:[%s4540_s4 + $0x3e0] sm:$0xff]  ;;  %v1859_v32 = vld [vmem:[#allocation2 + $0x2e] sm:$0xff]  ;;  %v1860_v36 = vld [vmem:[#allocation2 + $0x36] sm:$0xff] }
 0x143   : > { %3463 = vmatpush3.bf16.msra.mxu1 %v3460_v41  ;;  %3049 = vmatprep.mubr.f32.mxu1 %v1400_v63  ;;  %v2409_v41 = vld [vmem:[%s4540_s4 + $0x3b0] sm:$0xff]  ;;  %v3532_v63 = vpack.c.bf16 %v2416_v46, %v2415_v55  ;;  %v2039_v38 = vld [vmem:[%s4542_s6 + $0x20] sm:$0xff]  ;;  %v2040_v13 = vld [vmem:[%s4542_s6 + $0x28] sm:$0xff] }
 0x144   : > { %3465 = vmatprep.subr.bf16.mxu1 %v3464_v39  ;;  %v3520_v47 = vpack.c.bf16 %v2410_v45, %v2409_v41  ;;  %v3580_v41 = vpack.c.bf16 %v2040_v13, %v2039_v38  ;;  %v1862_v45 = vld [vmem:[#allocation2 + $0x46] sm:$0xff]  ;;  %v1864_v25 = vld [vmem:[#allocation2 + $0x56] sm:$0xff] }
 0x145   : > { %3371 = vmatpush3.bf16.msra.mxu0 %v3368_v53  ;;  %v3524_v53 = vpack.c.bf16 %v2412_v52, %v2411_v50  ;;  %v2042_v50 = vld [vmem:[%s4542_s6 + $0x38] sm:$0xff]  ;;  %v1863_v52 = vld [vmem:[#allocation2 + $0x4e] sm:$0xff]  ;;  %v2043_v51 = vld [vmem:[%s4542_s6 + $0x40] sm:$0xff] }
 0x146   : > { %3373 = vmatprep.subr.bf16.mxu0 %v3372_v58  ;;  %v2045_v46 = vld [vmem:[%s4542_s6 + $0x50] sm:$0xff] }
 0x147   : > { %3467 = vmatpush3.bf16.msra.mxu1 %v3464_v39  ;;  %v1561_v39 = vld [vmem:[#allocation2 + $0x5c] sm:$0xff] }
 0x148   : > { %3469 = vmatprep.subr.bf16.mxu1 %v3468_v61 }
 0x149   : > { %3375 = vmatpush3.bf16.msra.mxu0 %v3372_v58  ;;  %v2417_v58 = vld [vmem:[%s4540_s4 + $0x3f0] sm:$0xff] }
 0x14a   : > { %3377 = vmatprep.subr.bf16.mxu0 %v3376_v1  ;;  %v3536_v59 = vpack.c.bf16 %v2418_v44, %v2417_v58  ;;  %v2047_v58 = vld [vmem:[%s4542_s6 + $0x60] sm:$0xff]  ;;  %v2048_v44 = vld [vmem:[%s4542_s6 + $0x68] sm:$0xff] }
 0x14b   : > { %3471 = vmatpush3.bf16.msra.mxu1 %v3468_v61  ;;  %v2419_v61 = vld [vmem:[%s4540_s4 + $0x400] sm:$0xff] }
 0x14c   : > { %3473 = vmatprep.subr.bf16.mxu1 %v3472_v2  ;;  %v3540_v42 = vpack.c.bf16 %v2420_v0, %v2419_v61  ;;  %v2049_v61 = vld [vmem:[%s4542_s6 + $0x70] sm:$0xff]  ;;  %v2050_v0 = vld [vmem:[%s4542_s6 + $0x78] sm:$0xff] }
 0x14d   : > { %3379 = vmatpush3.bf16.msra.mxu0 %v3376_v1  ;;  %v2421_v1 = vld [vmem:[%s4540_s4 + $0x410] sm:$0xff] }
 0x14f   : > { %3475 = vmatpush3.bf16.msra.mxu1 %v3472_v2  ;;  %v2422_v2 = vld [vmem:[%s4540_s4 + $0x418] sm:$0xff] }
 0x150   : > { %2909 = vmatmul.mubr.f32.vlgmr.msra.gmra.mrb[14].mxu0 %v4081_v35  ;;  %3477 = vmatprep.subr.bf16.mxu1 %v3476_v6  ;;  %v3484_v35 = vpack.c.bf16 %v2392_v49, %v2391_v12  ;;  %v3544_v3 = vpack.c.bf16 %v2422_v2, %v2421_v1  ;;  %v2425_v12 = vld [vmem:[%s4540_s4 + $0x430] sm:$0xff]  ;;  %v2426_v49 = vld [vmem:[%s4540_s4 + $0x438] sm:$0xff] }
 0x151   : > { %2911 = vmatprep.mubr.f32.mxu0 %v4085_v40  ;;  %v1403_v40 = vld [vmem:[#allocation2 + $0x24] sm:$0xff] }
 0x152   : > { %3050 = vmatmul.mubr.f32.vlgmr.msra.gmra.mrb[0].mxu1 %v1401_v48 }
 0x153   : > { %3052 = vmatprep.mubr.f32.mxu1 %v4320_v14  ;;  %3479 = vmatpush3.bf16.msra.mxu1 %v3476_v6  ;;  %v2423_v6 = vld [vmem:[%s4540_s4 + $0x420] sm:$0xff] }
 0x154   : > { %2912 = vmatmul.mubr.f32.gmra.mrb[16].mxu0 %v4110_v56  ;;  %3481 = vmatprep.subr.bf16.mxu1 %v3480_v10  ;;  %v3488_v56 = vpack.c.bf16 %v2394_v18, %v2393_v17  ;;  %v2427_v17 = vld [vmem:[%s4540_s4 + $0x440] sm:$0xff]  ;;  %v2428_v18 = vld [vmem:[%s4540_s4 + $0x448] sm:$0xff] }
 0x155   : > { %2914 = vmatprep.mubr.f32.mxu0 %v4114_v62  ;;  %v1405_v62 = vld [vmem:[#allocation2 + $0x34] sm:$0xff] }
 0x156   : > { %3053 = vmatmul.mubr.f32.gmra.mrb[2].mxu1 %v1403_v40 }
 0x157   : > { %3055 = vmatprep.mubr.f32.mxu1 %v1404_v19  ;;  %3483 = vmatpush3.bf16.msra.mxu1 %v3480_v10  ;;  %v3548_v10 = vpack.c.bf16 %v2424_v8, %v2423_v6 }
 0x158   : > { %2915 = vmatmul.mubr.f32.gmra.mrb[18].mxu0 %v4131_v11  ;;  %3485 = vmatprep.subr.bf16.mxu1 %v3484_v35  ;;  %v3492_v11 = vpack.c.bf16 %v2396_v21, %v2395_v20  ;;  %v2429_v20 = vld [vmem:[%s4540_s4 + $0x450] sm:$0xff]  ;;  %v2430_v21 = vld [vmem:[%s4540_s4 + $0x458] sm:$0xff] }
 0x159   : > { %2917 = vmatprep.mubr.f32.mxu0 %v4134_v15  ;;  %v1407_v15 = vld [vmem:[#allocation2 + $0x44] sm:$0xff] }
 0x15a   : > { %3056 = vmatmul.mubr.f32.gmra.mrb[4].mxu1 %v1405_v62 }
 0x15b   : > { %3058 = vmatprep.mubr.f32.mxu1 %v1406_v60  ;;  %3487 = vmatpush3.bf16.msra.mxu1 %v3484_v35  ;;  %v3552_v35 = vpack.c.bf16 %v2426_v49, %v2425_v12 }
 0x15c   : > { %2918 = vmatmul.mubr.f32.gmra.mrb[20].mxu0 %v4149_v26  ;;  %3489 = vmatprep.subr.bf16.mxu1 %v3488_v56  ;;  %v3496_v26 = vpack.c.bf16 %v2398_v22, %v2397_v7  ;;  %v2431_v7 = vld [vmem:[%s4540_s4 + $0x460] sm:$0xff]  ;;  %v2432_v22 = vld [vmem:[%s4540_s4 + $0x468] sm:$0xff] }
 0x15d   : > { %2920 = vmatprep.mubr.f32.mxu0 %v4152_v30  ;;  %v2399_v30 = vld [vmem:[%s4540_s4 + $0x360] sm:$0xff] }
 0x15e   : > { %3059 = vmatmul.mubr.f32.gmra.mrb[6].mxu1 %v1407_v15  ;;  %v3500_v29 = vpack.c.bf16 %v2400_v27, %v2399_v30  ;;  %v2434_v30 = vld [vmem:[%s4540_s4 + $0x478] sm:$0xff] }
 0x15f   : > { %3061 = vmatprep.mubr.f32.mxu1 %v1408_v23  ;;  %3491 = vmatpush3.bf16.msra.mxu1 %v3488_v56  ;;  %v3556_v56 = vpack.c.bf16 %v2428_v18, %v2427_v17 }
 0x160   : > { %2921 = vmatmul.mubr.f32.gmra.mrb[22].mxu0 %v4173_v43  ;;  %3493 = vmatprep.subr.bf16.mxu1 %v3492_v11  ;;  %v2401_v43 = vld [vmem:[%s4540_s4 + $0x370] sm:$0xff] }
 0x161   : > { %v3504_v4 = vpack.c.bf16 %v2402_v31, %v2401_v43  ;;  %v1858_v43 = vld [vmem:[#allocation2 + $0x26] sm:$0xff] }
 0x162   : > { %3062 = vmatmul.mubr.f32.gmra.mrb[8].mxu1 %v1409_v24  ;;  %v2035_v31 = vld [vmem:[%s4542_s6] sm:$0xff] }
 0x163   : > { %3495 = vmatpush3.bf16.msra.mxu1 %v3492_v11  ;;  %3096 = vmatprep.mubr.f32.mxu1 %v1401_v48  ;;  %v1707_v48 = vld [vmem:[#allocation2 + $0x2d] sm:$0xff]  ;;  %v3560_v11 = vpack.c.bf16 %v2430_v21, %v2429_v20 }
 0x164   : > { %3497 = vmatprep.subr.bf16.mxu1 %v3496_v26 }
 0x167   : > { %3499 = vmatpush3.bf16.msra.mxu1 %v3496_v26  ;;  %v3564_v26 = vpack.c.bf16 %v2432_v22, %v2431_v7 }
 0x168   : > { %3501 = vmatprep.subr.bf16.mxu1 %v3500_v29 }
 0x16b   : > { %3503 = vmatpush3.bf16.msra.mxu1 %v3500_v29  ;;  %v1857_v29 = vld [vmem:[#allocation2 + $0x1e] sm:$0xff] }
 0x16c   : > { %3505 = vmatprep.subr.bf16.mxu1 %v3504_v4 }
 0x16f   : > { %3507 = vmatpush3.bf16.msra.mxu1 %v3504_v4  ;;  %v2036_v4 = vld [vmem:[%s4542_s6 + $0x8] sm:$0xff] }
 0x170   : > { %3509 = vmatprep.subr.bf16.mxu1 %v3508_v33 }
 0x172   : > { %3097 = vmatmul.mubr.f32.vlgmr.msra.gmra.mrb[0].mxu1 %v4320_v14  ;;  %v1708_v14 = vld [vmem:[#allocation2 + $0x35] sm:$0xff] }
 0x173   : > { %3099 = vmatprep.mubr.f32.mxu1 %v1403_v40  ;;  %3511 = vmatpush3.bf16.msra.mxu1 %v3508_v33  ;;  %v1709_v40 = vld [vmem:[#allocation2 + $0x3d] sm:$0xff]  ;;  %v3572_v33 = vpack.c.bf16 %v2036_v4, %v2035_v31 }
 0x174   : > { %3513 = vmatprep.subr.bf16.mxu1 %v3512_v37 }
 0x175   : > { %3573 = vmatprep.subr.bf16.mxu0 %v3572_v33 }
 0x176   : > { %3100 = vmatmul.mubr.f32.gmra.mrb[2].mxu1 %v1404_v19  ;;  %v1710_v19 = vld [vmem:[#allocation2 + $0x45] sm:$0xff]  ;;  %3575 = vmatpush3.bf16.msra.mxu0 %v3572_v33 }
 0x177   : > { %3102 = vmatprep.mubr.f32.mxu1 %v1405_v62  ;;  %3515 = vmatpush3.bf16.msra.mxu1 %v3512_v37  ;;  %v1711_v62 = vld [vmem:[#allocation2 + $0x4d] sm:$0xff]  ;;  %v3576_v37 = vpack.c.bf16 %v2038_v34, %v2037_v16 }
 0x178   : > { %3517 = vmatprep.subr.bf16.mxu1 %v3516_v28 }
 0x179   : > { %3577 = vmatprep.subr.bf16.mxu0 %v3576_v37 }
 0x17a   : > { %3103 = vmatmul.mubr.f32.gmra.mrb[4].mxu1 %v1406_v60  ;;  %v1712_v60 = vld [vmem:[#allocation2 + $0x55] sm:$0xff]  ;;  %3579 = vmatpush3.bf16.msra.mxu0 %v3576_v37 }
 0x17b   : > { %3105 = vmatprep.mubr.f32.mxu1 %v1407_v15  ;;  %3519 = vmatpush3.bf16.msra.mxu1 %v3516_v28  ;;  %v1713_v15 = vld [vmem:[#allocation2 + $0x5d] sm:$0xff] }
 0x17c   : > { %3521 = vmatprep.subr.bf16.mxu1 %v3520_v47  ;;  %v1861_v28 = vld [vmem:[#allocation2 + $0x3e] sm:$0xff]  ;;  %3581 = vmatprep.subr.bf16.mxu0 %v3580_v41 }
 0x17e   : > { %3106 = vmatmul.mubr.f32.gmra.mrb[6].mxu1 %v1408_v23  ;;  %v1856_v23 = vld [vmem:[#allocation2 + $0x16] sm:$0xff]  ;;  %3583 = vmatpush3.bf16.msra.mxu0 %v3580_v41 }
 0x17f   : > { %3108 = vmatprep.mubr.f32.mxu1 %v1409_v24  ;;  %3523 = vmatpush3.bf16.msra.mxu1 %v3520_v47  ;;  %v2433_v24 = vld [vmem:[%s4540_s4 + $0x470] sm:$0xff] }
 0x180   : > { %3525 = vmatprep.subr.bf16.mxu1 %v3524_v53  ;;  %v3568_v27 = vpack.c.bf16 %v2434_v30, %v2433_v24  ;;  %v2041_v47 = vld [vmem:[%s4542_s6 + $0x30] sm:$0xff] }
 0x182   : > { %3109 = vmatmul.mubr.f32.gmra.mrb[8].mxu1 %v1561_v39  ;;  %v1865_v39 = vld [vmem:[#allocation2 + $0x5e] sm:$0xff] }
 0x183   : > { %3527 = vmatpush3.bf16.msra.mxu1 %v3524_v53  ;;  %3143 = vmatprep.mubr.f32.mxu1 %v1704_v57  ;;  %v3584_v53 = vpack.c.bf16 %v2042_v50, %v2041_v47  ;;  %v2046_v57 = vld [vmem:[%s4542_s6 + $0x58] sm:$0xff] }
 0x184   : > { %3529 = vmatprep.subr.bf16.mxu1 %v3528_v54 }
 0x185   : > { %3585 = vmatprep.subr.bf16.mxu0 %v3584_v53 }
 0x186   : > { %3587 = vmatpush3.bf16.msra.mxu0 %v3584_v53 }
 0x187   : > { %3531 = vmatpush3.bf16.msra.mxu1 %v3528_v54  ;;  %v2044_v54 = vld [vmem:[%s4542_s6 + $0x48] sm:$0xff] }
 0x188   : > { %3533 = vmatprep.subr.bf16.mxu1 %v3532_v63  ;;  %v3588_v55 = vpack.c.bf16 %v2044_v54, %v2043_v51  ;;  %v2436_v51 = vld [vmem:[%s4543_s7] ss:$0 sm:$0xff] }
 0x18a   : > { %3589 = vmatprep.subr.bf16.mxu0 %v3588_v55 }
 0x18b   : > { %3535 = vmatpush3.bf16.msra.mxu1 %v3532_v63  ;;  %v3592_v63 = vpack.c.bf16 %v2046_v57, %v2045_v46  ;;  %3591 = vmatpush3.bf16.msra.mxu0 %v3588_v55 }
 0x18c   : > { %3537 = vmatprep.subr.bf16.mxu1 %v3536_v59 }
 0x18d   : > { %3593 = vmatprep.subr.bf16.mxu0 %v3592_v63 }
 0x18f   : > { %3539 = vmatpush3.bf16.msra.mxu1 %v3536_v59  ;;  %3595 = vmatpush3.bf16.msra.mxu0 %v3592_v63  ;;  %v3596_v59 = vpack.c.bf16 %v2048_v44, %v2047_v58 }
 0x190   : > { %3541 = vmatprep.subr.bf16.mxu1 %v3540_v42 }
 0x191   : > { %3597 = vmatprep.subr.bf16.mxu0 %v3596_v59 }
 0x192   : > { %3144 = vmatmul.mubr.f32.vlgmr.msra.gmra.mrb[0].mxu1 %v1705_v5 }
 0x193   : > { %3146 = vmatprep.mubr.f32.mxu1 %v1706_v9  ;;  %3543 = vmatpush3.bf16.msra.mxu1 %v3540_v42  ;;  %v3600_v42 = vpack.c.bf16 %v2050_v0, %v2049_v61 }
 0x194   : > { %3545 = vmatprep.subr.bf16.mxu1 %v3544_v3  ;;  %3599 = vmatpush3.bf16.msra.mxu0 %v3596_v59 }
 0x195   : > { %3601 = vmatprep.subr.bf16.mxu0 %v3600_v42 }
 0x196   : > { %3147 = vmatmul.mubr.f32.gmra.mrb[2].mxu1 %v1707_v48 }
 0x197   : > { %3149 = vmatprep.mubr.f32.mxu1 %v1708_v14  ;;  %3547 = vmatpush3.bf16.msra.mxu1 %v3544_v3  ;;  %v2435_v14 = vld [vmem:[%s4541_s5] ss:$0 sm:$0xff] }
 0x198   : > { %3549 = vmatprep.subr.bf16.mxu1 %v3548_v10  ;;  %3603 = vmatpush3.bf16.msra.mxu0 %v3600_v42 }
 0x19a   : > { %3150 = vmatmul.mubr.f32.gmra.mrb[4].mxu1 %v1709_v40 }
 0x19b   : > { %3152 = vmatprep.mubr.f32.mxu1 %v1710_v19  ;;  %3551 = vmatpush3.bf16.msra.mxu1 %v3548_v10 }
 0x19c   : > { %3553 = vmatprep.subr.bf16.mxu1 %v3552_v35 }
 0x19e   : > { %3153 = vmatmul.mubr.f32.gmra.mrb[6].mxu1 %v1711_v62 }
 0x19f   : > { %3155 = vmatprep.mubr.f32.mxu1 %v1712_v60  ;;  %3555 = vmatpush3.bf16.msra.mxu1 %v3552_v35 }
 0x1a0   : > { %3557 = vmatprep.subr.bf16.mxu1 %v3556_v56 }
 0x1a2   : > { %3156 = vmatmul.mubr.f32.gmra.mrb[8].mxu1 %v1713_v15 }
 0x1a3   : > { %3559 = vmatpush3.bf16.msra.mxu1 %v3556_v56  ;;  %3190 = vmatprep.mubr.f32.mxu1 %v1856_v23 }
 0x1a4   : > { %3561 = vmatprep.subr.bf16.mxu1 %v3560_v11 }
 0x1a7   : > { %3563 = vmatpush3.bf16.msra.mxu1 %v3560_v11 }
 0x1a8   : > { %3565 = vmatprep.subr.bf16.mxu1 %v3564_v26 }
 0x1ab   : > { %3567 = vmatpush3.bf16.msra.mxu1 %v3564_v26 }
 0x1ac   : > { %3569 = vmatprep.subr.bf16.mxu1 %v3568_v27 }
 0x1af   : > { %3571 = vmatpush3.bf16.msra.mxu1 %v3568_v27 }
 0x1b2   : > { %3191 = vmatmul.mubr.f32.vlgmr.msra.gmra.mrb[0].mxu1 %v1857_v29 }
 0x1b3   : > { %3193 = vmatprep.mubr.f32.mxu1 %v1858_v43 }
 0x1b6   : > { %3194 = vmatmul.mubr.f32.gmra.mrb[2].mxu1 %v1859_v32 }
 0x1b7   : > { %3196 = vmatprep.mubr.f32.mxu1 %v1860_v36 }
 0x1ba   : > { %3197 = vmatmul.mubr.f32.gmra.mrb[4].mxu1 %v1861_v28 }
 0x1bb   : > { %3199 = vmatprep.mubr.f32.mxu1 %v1862_v45 }
 0x1be   : > { %3200 = vmatmul.mubr.f32.gmra.mrb[6].mxu1 %v1863_v52 }
 0x1bf   : > { %3202 = vmatprep.mubr.f32.mxu1 %v1864_v25 }
 0x1c2   : > { %3203 = vmatmul.mubr.f32.gmra.mrb[8].mxu1 %v1865_v39 }
 0x223   : > { %v2910_v1 = vpop.f32.mrb[14].mxu0 }
 0x224   : > { %v1037_v2 = vpop.f32.mrb[15].mxu0 }
 0x227   : > { %v2913_v3 = vpop.f32.mrb[16].mxu0 }
 0x228   : > { %v1047_v5 = vpop.f32.mrb[17].mxu0 }
 0x22b   : > { %v2916_v6 = vpop.f32.mrb[18].mxu0 }
 0x22c   : > { %v1057_v8 = vpop.f32.mrb[19].mxu0 }
 0x22f   : > { %v2919_v9 = vpop.f32.mrb[20].mxu0 }
 0x230   : > { %v1067_v10 = vpop.f32.mrb[21].mxu0 }
 0x233   : > { %v2922_v48 = vpop.f32.mrb[22].mxu0 }
 0x234   : > { %v1077_v12 = vpop.f32.mrb[23].mxu0 }
 0x285   : > { %v3192_v49 = vpop.f32.mrb[0].mxu1 }
 0x286   : > { %v3604_v35 = vadd.f32 %v3192_v49, %v2910_v1  ;;  %v1949_v40 = vpop.f32.mrb[1].mxu1 }
 0x287   : > { %v3605_v17 = vadd.f32 %v1949_v40, %v1037_v2 }
 0x288   : > { %v2016_v18 = vadd.f32 %v3604_v35, %v2435_v14 }
 0x289   : > { %v2015_v19 = vadd.f32 %v3605_v17, %v2435_v14  ;;  %v3195_v56 = vpop.f32.mrb[2].mxu1 }
 0x28a   : > { %v3606_v62 = vadd.f32 %v3195_v56, %v2913_v3  ;;  %v1959_v20 = vpop.f32.mrb[3].mxu1  ;;  %v2026_v11 = vmax.f32 %v2016_v18, 0.0 }
 0x28b   : > { %v2025_v21 = vmax.f32 %v2015_v19, 0.0  ;;  %v3607_v60 = vadd.f32 %v1959_v20, %v1047_v5 }
 0x28c   : > { %v2018_v15 = vadd.f32 %v3606_v62, %v2435_v14 }
 0x28d   : > { %v2017_v7 = vadd.f32 %v3607_v60, %v2435_v14  ;;  %v3198_v22 = vpop.f32.mrb[4].mxu1  ;;  %3237 = vmatprep.mubr.f32.mxu0 %v2025_v21 }
 0x28e   : > { %v3608_v23 = vadd.f32 %v3198_v22, %v2916_v6  ;;  %v1969_v26 = vpop.f32.mrb[5].mxu1  ;;  %3238 = vmatmul.mubr.f32.vlgmr.msra.gmra.mrb[24].mxu0 %v2026_v11  ;;  %v2028_v27 = vmax.f32 %v2018_v15, 0.0 }
 0x28f   : > { %v2027_v24 = vmax.f32 %v2017_v7, 0.0  ;;  %v3609_v30 = vadd.f32 %v1969_v26, %v1057_v8 }
 0x290   : > { %v2020_v29 = vadd.f32 %v3608_v23, %v2435_v14 }
 0x291   : > { %v2019_v43 = vadd.f32 %v3609_v30, %v2435_v14  ;;  %v3201_v31 = vpop.f32.mrb[6].mxu1  ;;  %3240 = vmatprep.mubr.f32.mxu0 %v2027_v24 }
 0x292   : > { %v3610_v4 = vadd.f32 %v3201_v31, %v2919_v9  ;;  %v1979_v16 = vpop.f32.mrb[7].mxu1  ;;  %3241 = vmatmul.mubr.f32.gmra.mrb[26].mxu0 %v2028_v27  ;;  %v2030_v34 = vmax.f32 %v2020_v29, 0.0 }
 0x293   : > { %v2029_v32 = vmax.f32 %v2019_v43, 0.0  ;;  %v3611_v33 = vadd.f32 %v1979_v16, %v1067_v10 }
 0x294   : > { %v2022_v36 = vadd.f32 %v3610_v4, %v2435_v14 }
 0x295   : > { %v2021_v37 = vadd.f32 %v3611_v33, %v2435_v14  ;;  %v3204_v38 = vpop.f32.mrb[8].mxu1  ;;  %3243 = vmatprep.mubr.f32.mxu0 %v2029_v32 }
 0x296   : > { %v3612_v13 = vadd.f32 %v3204_v38, %v2922_v48  ;;  %v1989_v28 = vpop.f32.mrb[9].mxu1  ;;  %3244 = vmatmul.mubr.f32.gmra.mrb[28].mxu0 %v2030_v34  ;;  %v2032_v47 = vmax.f32 %v2022_v36, 0.0 }
 0x297   : > { %v2031_v41 = vmax.f32 %v2021_v37, 0.0  ;;  %v3613_v45 = vadd.f32 %v1989_v28, %v1077_v12 }
 0x298   : > { %v2024_v50 = vadd.f32 %v3612_v13, %v2435_v14 }
 0x299   : > { %v2023_v52 = vadd.f32 %v3613_v45, %v2435_v14  ;;  %3246 = vmatprep.mubr.f32.mxu0 %v2031_v41 }
 0x29a   : > { %3247 = vmatmul.mubr.f32.gmra.mrb[30].mxu0 %v2032_v47  ;;  %v2034_v25 = vmax.f32 %v2024_v50, 0.0 }
 0x29b   : > { %v2033_v53 = vmax.f32 %v2023_v52, 0.0 }
 0x29d   : > { %3249 = vmatprep.mubr.f32.mxu0 %v2033_v53 }
 0x29e   : > { %3250 = vmatmul.mubr.f32.gmra.mrb[32].mxu0 %v2034_v25 }
 0x361   : > { %v3239_v54 = vpop.f32.mrb[24].mxu0 }
 0x362   : > { %v2130_v39 = vadd.f32 %v3239_v54, %v2436_v51  ;;  %v2124_v55 = vpop.f32.mrb[25].mxu0 }
 0x363   : > { %v2125_v46 = vadd.f32 %v2436_v51, %v2124_v55 }
 0x364   : > { %v2174_v57 = vmax.f32 %v2130_v39, 0.0 }
 0x365   : > { %v2173_v63 = vmax.f32 %v2125_v46, 0.0  ;;  %v3242_v58 = vpop.f32.mrb[26].mxu0 }
 0x366   : > { %2184 = vst [vmem:[%s4515_s9 + $0x8] sm:$0xff] %v2174_v57  ;;  %v2140_v44 = vadd.f32 %v3242_v58, %v2436_v51  ;;  %v2134_v59 = vpop.f32.mrb[27].mxu0 }
 0x367   : > { %2183 = vst [vmem:[%s4515_s9] sm:$0xff] %v2173_v63  ;;  %v2135_v61 = vadd.f32 %v2436_v51, %v2134_v59 }
 0x368   : > { %v2176_v0 = vmax.f32 %v2140_v44, 0.0 }
 0x369   : > { %v2175_v42 = vmax.f32 %v2135_v61, 0.0  ;;  %v3245_v1 = vpop.f32.mrb[28].mxu0 }
 0x36a   : > { %2186 = vst [vmem:[%s4515_s9 + $0x18] sm:$0xff] %v2176_v0  ;;  %v2150_v2 = vadd.f32 %v3245_v1, %v2436_v51  ;;  %v2144_v3 = vpop.f32.mrb[29].mxu0 }
 0x36b   : > { %2185 = vst [vmem:[%s4515_s9 + $0x10] sm:$0xff] %v2175_v42  ;;  %v2145_v5 = vadd.f32 %v2436_v51, %v2144_v3 }
 0x36c   : > { %v2178_v6 = vmax.f32 %v2150_v2, 0.0 }
 0x36d   : > { %v2177_v8 = vmax.f32 %v2145_v5, 0.0  ;;  %v3248_v9 = vpop.f32.mrb[30].mxu0 }
 0x36e   : > { %2188 = vst [vmem:[%s4515_s9 + $0x28] sm:$0xff] %v2178_v6  ;;  %v2160_v10 = vadd.f32 %v3248_v9, %v2436_v51  ;;  %v2154_v48 = vpop.f32.mrb[31].mxu0 }
 0x36f   : > { %2187 = vst [vmem:[%s4515_s9 + $0x20] sm:$0xff] %v2177_v8  ;;  %v2155_v12 = vadd.f32 %v2436_v51, %v2154_v48 }
 0x370   : > { %v2180_v49 = vmax.f32 %v2160_v10, 0.0 }
 0x371   : > { %v2179_v14 = vmax.f32 %v2155_v12, 0.0  ;;  %v3251_v35 = vpop.f32.mrb[32].mxu0 }
 0x372   : > { %2190 = vst [vmem:[%s4515_s9 + $0x38] sm:$0xff] %v2180_v49  ;;  %v2170_v40 = vadd.f32 %v3251_v35, %v2436_v51  ;;  %v2164_v17 = vpop.f32.mrb[33].mxu0 }
 0x373   : > { %2189 = vst [vmem:[%s4515_s9 + $0x30] sm:$0xff] %v2179_v14  ;;  %v2165_v18 = vadd.f32 %v2436_v51, %v2164_v17 }
 0x374   : > { %v2182_v19 = vmax.f32 %v2170_v40, 0.0 }
 0x375   : > { %v2181_v56 = vmax.f32 %v2165_v18, 0.0 }
 0x376   : > { %2192 = vst [vmem:[%s4515_s9 + $0x48] sm:$0xff] %v2182_v19 }
 0x377   : > { %2191 = vst [vmem:[%s4515_s9 + $0x40] sm:$0xff] %v2181_v56 }
 0x378 PF: > { %s18_s29 = sadd.s32 1, %s3735_s29   ;;  %s4545_s27 = smov %s3731_s28 }
 0x379   : > { %p15_p5 = scmp.ge.s32.totalorder %s18_s29, 4   ;;  %s4546_s28 = smov %s4548_s30 }
 0x37b   :  { %17 = sbr.rel (!%p15_p5) target bundleno = 2 (0x2), region = 93 }

</bundles_post_ra>
